<compile_context>
chip_gen: v7x
topology: tpu7x:2x2x1
jax: 0.10.0
libtpu: 0.0.40
codegen_flags: <defaults>
</compile_context>

<pallas_src>
import functools
import math

import numpy as np

import jax
import jax.numpy as jnp
from jax import lax
from jax.experimental import pallas as pl
from jax.experimental.pallas import tpu as pltpu


_SQRT_HALF = 1.0 / math.sqrt(2.0)


def _gelu(x, approximate=False):
    if approximate:
        # tanh approximation (EUP-friendly); NOT bit-identical to PyTorch default.
        c = math.sqrt(2.0 / math.pi)
        return 0.5 * x * (1.0 + jnp.tanh(c * (x + 0.044715 * x * x * x)))
    # PyTorch's default F.gelu is the exact erf-based variant.
    return 0.5 * x * (1.0 + lax.erf(x * _SQRT_HALF))


def _layernorm(x, gamma, beta, eps):
    mean = jnp.mean(x, axis=-1, keepdims=True)
    var = jnp.mean(jnp.square(x - mean), axis=-1, keepdims=True)
    return (x - mean) * lax.rsqrt(var + eps) * gamma + beta


def _round_up(n, m):
    return ((n + m - 1) // m) * m


# ----------------------------------------------------------------------------
# Hardware-aware VMEM budgeting
# ----------------------------------------------------------------------------

@functools.lru_cache(maxsize=None)
def _vmem_capacity_bytes():
    try:
        info = pltpu.get_tpu_info()
        return int(getattr(info, "vmem_capacity_bytes", 128 << 20))
    except Exception:
        return 128 << 20  # v5e/v6e default


def _vmem_limit(requested):
    cap = _vmem_capacity_bytes()
    ceiling = int(cap * 0.8)            # leave headroom (v7x: ~51 MiB of 64 MiB)
    floor = min(32 << 20, ceiling)
    return int(min(max(int(requested), floor), ceiling))


# ----------------------------------------------------------------------------
# Probe: single-buffer constant blocks with pipeline_mode=pl.Buffered(1)?
# ----------------------------------------------------------------------------

_SINGLE_BUFFER_OK = None


def _single_buffer_supported():
    global _SINGLE_BUFFER_OK
    if _SINGLE_BUFFER_OK is None:
        ok = False
        if hasattr(pl, "Buffered"):
            try:
                def _probe(x_ref, o_ref):
                    o_ref[...] = x_ref[...] + 1.0

                y = pl.pallas_call(
                    _probe,
                    out_shape=jax.ShapeDtypeStruct((8, 128), jnp.float32),
                    grid=(1,),
                    in_specs=[pl.BlockSpec((8, 128), lambda i: (0, 0),
                                           pipeline_mode=pl.Buffered(1))],
                    out_specs=pl.BlockSpec((8, 128), lambda i: (0, 0)),
                )(jnp.zeros((8, 128), jnp.float32))
                jax.block_until_ready(y)
                ok = True
            except Exception:
                ok = False
        _SINGLE_BUFFER_OK = ok
    return _SINGLE_BUFFER_OK


def _const_spec(shape, single_buffer):
    index_map = lambda i, _nd=len(shape): (0,) * _nd
    if single_buffer:
        # Block index is constant across the grid -> one resident VMEM copy.
        return pl.BlockSpec(shape, index_map, pipeline_mode=pl.Buffered(1))
    return pl.BlockSpec(shape, index_map)


# ----------------------------------------------------------------------------
# Kernels
# ----------------------------------------------------------------------------

def _ln_qkv_kernel(x_ref, g_ref, b_ref, wqkv_ref, bqkv_ref, o_ref, *, eps):
    x = x_ref[...]
    xn = _layernorm(x, g_ref[...], b_ref[...], eps)
    qkv = jnp.dot(xn.astype(wqkv_ref.dtype), wqkv_ref[...],
                  preferred_element_type=jnp.float32)
    o_ref[...] = (qkv + bqkv_ref[...]).astype(o_ref.dtype)


def _attn_out_res_kernel(qkv_ref, res_ref, wo_ref, bo_ref, o_ref, *prob_refs,
                         num_heads, scale, exact, vis):
    """All heads of one batch element; fused output projection + residual."""
    S = qkv_ref.shape[1]
    H = qkv_ref.shape[2] // 3
    dh = H // num_heads
    cdt = wo_ref.dtype                       # matmul operand dtype (f32 or bf16)
    qkv = qkv_ref[0]                         # (S, 3H), f32

    ctx_parts = []
    for hd in range(num_heads):
        lo = hd * dh
        q_h = qkv[:, lo:lo + dh].astype(cdt)                    # (S, dh)
        k_h = qkv[:, H + lo:H + lo + dh].astype(cdt)            # (S, dh)
        v_h = qkv[:, 2 * H + lo:2 * H + lo + dh].astype(cdt)    # (S, dh)
        s = lax.dot_general(q_h, k_h, (((1,), (1,)), ((), ())),
                            preferred_element_type=jnp.float32) * scale
        s = s - jnp.max(s, axis=-1, keepdims=True)
        p = jnp.exp(s)                                          # unnormalized
        l = jnp.sum(p, axis=-1, keepdims=True)
        inv = (1.0 / l) if exact else pl.reciprocal(l, approx=True)
        # attention dropout omitted (identity at inference)
        ctx_h = jnp.dot(p.astype(cdt), v_h,
                        preferred_element_type=jnp.float32) * inv
        ctx_parts.append(ctx_h)
        if vis:
            prob_refs[0][0, hd] = (p * inv).astype(prob_refs[0].dtype)

    ctx = jnp.concatenate(ctx_parts, axis=-1)                   # (S, H) lane-dense
    y = jnp.dot(ctx.astype(cdt), wo_ref[...],
                preferred_element_type=jnp.float32)
    # projection dropout omitted (identity at inference)
    o_ref[0] = (y + bo_ref[...] + res_ref[0]).astype(o_ref.dtype)


def _ln_mlp_res_kernel(x_ref, g_ref, b_ref, w1_ref, b1_ref, w2_ref, b2_ref,
                       o_ref, *, eps, gelu_approx):
    x = x_ref[...]
    xn = _layernorm(x, g_ref[...], b_ref[...], eps)
    h = jnp.dot(xn.astype(w1_ref.dtype), w1_ref[...],
                preferred_element_type=jnp.float32)
    h = _gelu(h + b1_ref[...], approximate=gelu_approx)
    # MLP dropout omitted (identity at inference)
    y = jnp.dot(h.astype(w2_ref.dtype), w2_ref[...],
                preferred_element_type=jnp.float32)
    o_ref[...] = (y + b2_ref[...] + x).astype(o_ref.dtype)


def _ln_kernel(x_ref, g_ref, b_ref, o_ref, *, eps):
    o_ref[...] = _layernorm(x_ref[...], g_ref[...], b_ref[...],
                            eps).astype(o_ref.dtype)


# ----------------------------------------------------------------------------
# pallas_call drivers
# ----------------------------------------------------------------------------

def _row_call(kernel_fn, kernel_kwargs, row_inputs, const_inputs, out_cols, *,
              tile_m, single_buffer, out_dtype=jnp.float32):
    """Row-tiled call over M = B*S rows; params resident in VMEM. No padding:
    grid = cdiv(M, tm), the ragged last block is masked by Pallas (rows are
    independent in every row kernel)."""
    M = row_inputs[0].shape[0]
    tm = min(tile_m, _round_up(M, 8))
    grid = (pl.cdiv(M, tm),)

    in_specs = [pl.BlockSpec((tm, r.shape[1]), lambda i: (i, 0))
                for r in row_inputs]
    in_specs += [_const_spec(c.shape, single_buffer) for c in const_inputs]
    out_spec = pl.BlockSpec((tm, out_cols), lambda i: (i, 0))

    # Scoped-VMEM budget: resident params (x1 if single-buffered, else x2),
    # double-buffered row tiles, plus headroom for in-kernel f32 intermediates
    # (e.g. the (tm, mlp_dim) GELU activation).  Clamped to the chip's capacity.
    const_bytes = sum(int(np.prod(c.shape)) * c.dtype.itemsize
                      for c in const_inputs)
    row_bytes = sum(2 * tm * r.shape[1] * r.dtype.itemsize for r in row_inputs)
    out_bytes = 2 * tm * out_cols * np.dtype(out_dtype).itemsize
    widest = max([out_cols] + [c.shape[-1] for c in const_inputs])
    interm_bytes = 4 * tm * widest * 4
    requested = ((1 if single_buffer else 2) * const_bytes
                 + row_bytes + out_bytes + interm_bytes + (4 << 20))

    return pl.pallas_call(
        functools.partial(kernel_fn, **kernel_kwargs),
        out_shape=jax.ShapeDtypeStruct((M, out_cols), out_dtype),
        grid_spec=pltpu.PrefetchScalarGridSpec(
            num_scalar_prefetch=0, grid=grid,
            in_specs=in_specs, out_specs=out_spec),
        compiler_params=pltpu.CompilerParams(
            dimension_semantics=("parallel",),
            vmem_limit_bytes=_vmem_limit(requested)),
    )(*row_inputs, *const_inputs)


def _attention_call(qkv, res, wo, bo, *, num_heads, scale, exact, vis,
                    single_buffer):
    """Grid over batch; all heads per step; fused out-proj + residual.
    Output is lane-dense (B, S, H) -> no masked dh-wide stores, no XLA
    head-merge transpose afterwards."""
    B, S, H3 = qkv.shape
    H = H3 // 3

    in_specs = [pl.BlockSpec((1, S, H3), lambda i: (i, 0, 0)),
                pl.BlockSpec((1, S, H), lambda i: (i, 0, 0)),
                _const_spec(wo.shape, single_buffer),
                _const_spec(bo.shape, single_buffer)]
    if vis:
        out_shape = (jax.ShapeDtypeStruct((B, S, H), jnp.float32),
                     jax.ShapeDtypeStruct((B, num_heads, S, S), jnp.float32))
        out_specs = (pl.BlockSpec((1, S, H), lambda i: (i, 0, 0)),
                     pl.BlockSpec((1, num_heads, S, S), lambda i: (i, 0, 0, 0)))
    else:
        out_shape = jax.ShapeDtypeStruct((B, S, H), jnp.float32)
        out_specs = pl.BlockSpec((1, S, H), lambda i: (i, 0, 0))

    wo_bytes = int(np.prod(wo.shape)) * wo.dtype.itemsize
    act_bytes = 2 * (S * H3 + 2 * S * H) * 4
    probs_bytes = (2 * num_heads * S * S * 4) if vis else 0
    interm_bytes = 6 * num_heads * S * S * 4 + 6 * S * H * 4
    requested = ((1 if single_buffer else 2) * wo_bytes + act_bytes
                 + probs_bytes + interm_bytes + (4 << 20))

    outs = pl.pallas_call(
        functools.partial(_attn_out_res_kernel, num_heads=num_heads,
                          scale=scale, exact=exact, vis=vis),
        out_shape=out_shape,
        grid_spec=pltpu.PrefetchScalarGridSpec(
            num_scalar_prefetch=0, grid=(B,),
            in_specs=in_specs, out_specs=out_specs),
        compiler_params=pltpu.CompilerParams(
            dimension_semantics=("parallel",),
            vmem_limit_bytes=_vmem_limit(requested)),
    )(qkv, res, wo, bo)
    if vis:
        return outs[0], outs[1]
    return outs, None


# ----------------------------------------------------------------------------
# Param packing (one-time) and jitted forward
# ----------------------------------------------------------------------------

def prepare_encoder_params(params, matmul_dtype=jnp.bfloat16):
    """Pack weights once: QKV concat, (1, .) bias/LN reshapes, matmul-dtype casts.
    Keeps this work out of the per-forward path."""
    layers = []
    for layer in params["layers"]:
        H = layer["wq"].shape[0]
        layers.append(dict(
            ln1_g=layer["ln1_g"].reshape(1, H).astype(jnp.float32),
            ln1_b=layer["ln1_b"].reshape(1, H).astype(jnp.float32),
            wqkv=jnp.concatenate([layer["wq"], layer["wk"], layer["wv"]],
                                 axis=1).astype(matmul_dtype),
            bqkv=jnp.concatenate([layer["bq"], layer["bk"], layer["bv"]]
                                 ).reshape(1, 3 * H).astype(jnp.float32),
            wo=layer["wo"].astype(matmul_dtype),
            bo=layer["bo"].reshape(1, H).astype(jnp.float32),
            ln2_g=layer["ln2_g"].reshape(1, H).astype(jnp.float32),
            ln2_b=layer["ln2_b"].reshape(1, H).astype(jnp.float32),
            w1=layer["w1"].astype(matmul_dtype),
            b1=layer["b1"].reshape(1, -1).astype(jnp.float32),
            w2=layer["w2"].astype(matmul_dtype),
            b2=layer["b2"].reshape(1, H).astype(jnp.float32),
        ))
    return dict(layers=tuple(layers),
                ln_f_g=params["ln_f_g"].reshape(1, -1).astype(jnp.float32),
                ln_f_b=params["ln_f_b"].reshape(1, -1).astype(jnp.float32))


@functools.partial(jax.jit,
                   static_argnames=("num_heads", "eps", "tile_m",
                                    "single_buffer", "vis", "exact",
                                    "gelu_approx"))
def _encoder_forward_packed(hidden_states, packed, *, num_heads, eps, tile_m,
                            single_buffer, vis, exact, gelu_approx):
    B, S, H = hidden_states.shape
    dh = H // num_heads
    M = B * S
    scale = 1.0 / math.sqrt(dh)

    h = hidden_states.reshape(M, H).astype(jnp.float32)
    attn_weights = []

    for layer in packed["layers"]:
        # ---- attention (pre-LN fused into the packed QKV projection) ----
        qkv = _row_call(
            _ln_qkv_kernel, dict(eps=eps),
            row_inputs=[h],
            const_inputs=[layer["ln1_g"], layer["ln1_b"],
                          layer["wqkv"], layer["bqkv"]],
            out_cols=3 * H, tile_m=tile_m, single_buffer=single_buffer)

        attn_out, probs = _attention_call(
            qkv.reshape(B, S, 3 * H), h.reshape(B, S, H),
            layer["wo"], layer["bo"],
            num_heads=num_heads, scale=scale, exact=exact, vis=vis,
            single_buffer=single_buffer)
        h = attn_out.reshape(M, H)
        if vis:
            attn_weights.append(probs)

        # ---- MLP (LN + fc1 + GELU + fc2 + residual in one kernel) ----
        # TODO(synk): for ViT-L/H-sized mlp_dim on v7x, add an inner grid axis
        # over mlp_dim with an f32 accumulator; bf16 weights + Buffered(1)
        # already keep typical configs within the 64 MiB VMEM budget.
        h = _row_call(
            _ln_mlp_res_kernel, dict(eps=eps, gelu_approx=gelu_approx),
            row_inputs=[h],
            const_inputs=[layer["ln2_g"], layer["ln2_b"],
                          layer["w1"], layer["b1"],
                          layer["w2"], layer["b2"]],
            out_cols=H, tile_m=tile_m, single_buffer=single_buffer)

    encoded = _row_call(
        _ln_kernel, dict(eps=eps),
        row_inputs=[h],
        const_inputs=[packed["ln_f_g"], packed["ln_f_b"]],
        out_cols=H, tile_m=tile_m, single_buffer=single_buffer)
    return encoded.reshape(B, S, H), tuple(attn_weights)


def encoder_forward_pallas(hidden_states, params=None, *, num_heads, eps=1e-6,
                           tile_m=None, matmul_dtype=jnp.bfloat16, vis=False,
                           gelu_approx=False, packed=None):
    """Returns (encoded, attn_weights) like the PyTorch Encoder (eval mode)."""
    B, S, H = hidden_states.shape
    assert H % num_heads == 0
    if packed is None:
        assert params is not None
        packed = prepare_encoder_params(params, matmul_dtype=matmul_dtype)
    if tile_m is None:
        # 512-row tiles on 128-MiB-VMEM chips (v5e/v6e), 256 on v7x (64 MiB).
        tile_m = 512 if _vmem_capacity_bytes() >= (100 << 20) else 256
    single_buffer = _single_buffer_supported()
    # Strict f32 path keeps exact softmax normalization; bf16 path uses EUP
    # approx reciprocal (normalization applied after the PV matmul).
    exact = packed["layers"][0]["wqkv"].dtype == jnp.dtype(jnp.float32)
    encoded, attn = _encoder_forward_packed(
        hidden_states, packed, num_heads=int(num_heads), eps=float(eps),
        tile_m=int(tile_m), single_buffer=bool(single_buffer), vis=bool(vis),
        exact=bool(exact), gelu_approx=bool(gelu_approx))
    return encoded, list(attn)


# ----------------------------------------------------------------------------
# Pure-JAX reference and parameter init
# ----------------------------------------------------------------------------

def encoder_forward_reference(hidden_states, params, *, num_heads, eps=1e-6,
                              vis=False):
    B, S, H = hidden_states.shape
    dh = H // num_heads
    h = hidden_states.astype(jnp.float32)
    attn_probs = []
    for layer in params["layers"]:
        xn = _layernorm(h, layer["ln1_g"], layer["ln1_b"], eps)
        q = xn @ layer["wq"] + layer["bq"]
        k = xn @ layer["wk"] + layer["bk"]
        v = xn @ layer["wv"] + layer["bv"]

        def heads(t):
            return t.reshape(B, S, num_heads, dh).transpose(0, 2, 1, 3)

        scores = jnp.einsum("bhqd,bhkd->bhqk", heads(q), heads(k)) / math.sqrt(dh)
        probs = jax.nn.softmax(scores, axis=-1)
        if vis:
            attn_probs.append(probs)
        ctx = jnp.einsum("bhqk,bhkd->bhqd", probs, heads(v))
        ctx = ctx.transpose(0, 2, 1, 3).reshape(B, S, H)
        h = h + (ctx @ layer["wo"] + layer["bo"])

        xn = _layernorm(h, layer["ln2_g"], layer["ln2_b"], eps)
        mlp = _gelu(xn @ layer["w1"] + layer["b1"]) @ layer["w2"] + layer["b2"]
        h = h + mlp
    return _layernorm(h, params["ln_f_g"], params["ln_f_b"], eps), attn_probs


def init_encoder_params(key, *, num_layers, hidden, mlp_dim, num_heads):
    """Weights stored as (in_features, out_features) == PyTorch Linear.weight.T."""
    def xavier(k, fan_in, fan_out):
        bound = math.sqrt(6.0 / (fan_in + fan_out))
        return jax.random.uniform(k, (fan_in, fan_out), jnp.float32,
                                  minval=-bound, maxval=bound)

    layers = []
    for lk in jax.random.split(key, num_layers):
        ks = jax.random.split(lk, 12)
        layers.append(dict(
            ln1_g=1.0 + 0.02 * jax.random.normal(ks[0], (hidden,), jnp.float32),
            ln1_b=0.02 * jax.random.normal(ks[1], (hidden,), jnp.float32),
            wq=xavier(ks[2], hidden, hidden),
            bq=0.02 * jax.random.normal(ks[3], (hidden,), jnp.float32),
            wk=xavier(ks[4], hidden, hidden),
            bk=jnp.zeros((hidden,), jnp.float32),
            wv=xavier(ks[5], hidden, hidden),
            bv=jnp.zeros((hidden,), jnp.float32),
            wo=xavier(ks[6], hidden, hidden),
            bo=0.02 * jax.random.normal(ks[7], (hidden,), jnp.float32),
            ln2_g=1.0 + 0.02 * jax.random.normal(ks[8], (hidden,), jnp.float32),
            ln2_b=0.02 * jax.random.normal(ks[9], (hidden,), jnp.float32),
            # Mlp._init_weights: xavier_uniform_ weights, normal(std=1e-6) biases
            w1=xavier(ks[10], hidden, mlp_dim),
            b1=1e-6 * jax.random.normal(ks[11], (mlp_dim,), jnp.float32),
            w2=xavier(jax.random.fold_in(lk, 99), mlp_dim, hidden),
            b2=1e-6 * jax.random.normal(jax.random.fold_in(lk, 100),
                                        (hidden,), jnp.float32),
        ))
    return dict(
        layers=layers,
        ln_f_g=1.0 + 0.02 * jax.random.normal(jax.random.fold_in(key, 7),
                                              (hidden,), jnp.float32),
        ln_f_b=0.02 * jax.random.normal(jax.random.fold_in(key, 8),
                                        (hidden,), jnp.float32),
    )


if __name__ == "__main__":
    # Small ViT-style config: batch=2, seq=8, hidden=32, heads=4, mlp_dim=128, layers=2
    B, S, H, NH, D, L = 2, 8, 32, 4, 128, 2
    key = jax.random.PRNGKey(0)
    kx, kp = jax.random.split(key)
    x = jax.random.normal(kx, (B, S, H), jnp.float32)
    params = init_encoder_params(kp, num_layers=L, hidden=H, mlp_dim=D,
                                 num_heads=NH)

    ref, ref_probs = encoder_forward_reference(x, params, num_heads=NH, vis=True)

    # Strict f32 parity path (exact softmax normalization, exact erf GELU),
    # including the vis=True attention-probability outputs.
    packed_f32 = prepare_encoder_params(params, matmul_dtype=jnp.float32)
    enc_f32, probs_f32 = encoder_forward_pallas(x, packed=packed_f32,
                                                num_heads=NH, vis=True)
    enc_f32 = jax.block_until_ready(enc_f32)
    assert enc_f32.shape == (B, S, H)
    assert len(probs_f32) == L and probs_f32[0].shape == (B, NH, S, S)
    assert bool(jnp.allclose(enc_f32, ref, atol=1e-3, rtol=1e-3)), \
        "f32 Pallas encoder mismatch vs reference"
    for p_pl, p_ref in zip(probs_f32, ref_probs):
        assert bool(jnp.allclose(p_pl, p_ref, atol=1e-3, rtol=1e-3)), \
            "f32 Pallas attention-probability mismatch vs reference"

    # Default performance path: bf16 matmul operands (f32 accumulation, f32
    # LN/softmax/GELU), approx-reciprocal softmax normalization, vis=False.
    enc_bf16, attn_w = encoder_forward_pallas(x, params, num_heads=NH)
    enc_bf16 = jax.block_until_ready(enc_bf16)
    assert isinstance(attn_w, list) and len(attn_w) == 0
    assert bool(jnp.all(jnp.isfinite(enc_bf16)))
    assert bool(jnp.allclose(enc_bf16, ref, atol=0.15, rtol=0.15)), \
        "bf16 Pallas encoder mismatch vs reference"

    print("KERNEL_OK")
</pallas_src>

<mosaic_0001>
module attributes {stable_mosaic.version = 11 : i64} {
  func.func @_probe(%arg0: i32, %arg1: memref<8x128xf32, #tpu.memory_space<vmem>>, %arg2: memref<8x128xf32, #tpu.memory_space<vmem>>) attributes {dimension_semantics = [#tpu.dimension_semantics<arbitrary>], iteration_bounds = array<i64: 1>, scalar_prefetch = 0 : i64, scratch_operands = 0 : i64, tpu.core_type = #tpu.core_type<tc>, window_params = [{pipeline_mode = #tpu.pipeline_mode<synchronous>, transform_indices = @transform_0, window_bounds = array<i64: 8, 128>}, {pipeline_mode = #tpu.pipeline_mode<synchronous>, transform_indices = @transform_1, window_bounds = array<i64: 8, 128>}]} {
    %c0 = arith.constant 0 : index
    %c0_0 = arith.constant 0 : index
    %0 = vector.load %arg1[%c0, %c0_0] : memref<8x128xf32, #tpu.memory_space<vmem>>, vector<8x128xf32>
    %cst = arith.constant 1.000000e+00 : f32
    %1 = vector.broadcast %cst : f32 to vector<8x128xf32>
    %2 = arith.addf %0, %1 : vector<8x128xf32>
    %c0_1 = arith.constant 0 : index
    %c0_2 = arith.constant 0 : index
    %3 = vector.load %arg2[%c0_1, %c0_2] : memref<8x128xf32, #tpu.memory_space<vmem>>, vector<8x128xf32>
    tpu.vector_store %arg2[%c0_1, %c0_2], %2 {strides = array<i32>} : memref<8x128xf32, #tpu.memory_space<vmem>>, vector<8x128xf32>,
    return
  }
  func.func @transform_0(%arg0: i32) -> (i32, i32) {
    %c0_i32 = arith.constant 0 : i32
    %c0_i32_0 = arith.constant 0 : i32
    %c0_i32_1 = arith.constant 0 : i32
    return %c0_i32, %c0_i32_0 : i32, i32
  }
  func.func @transform_1(%arg0: i32) -> (i32, i32) {
    %c0_i32 = arith.constant 0 : i32
    %c0_i32_0 = arith.constant 0 : i32
    %c0_i32_1 = arith.constant 0 : i32
    return %c0_i32, %c0_i32_0 : i32, i32
  }
}

module attributes {stable_mosaic.version = 11 : i64} {
  func.func @_ln_mlp_res_kernel(%arg0: i32, %arg1: memref<16x32xf32, #tpu.memory_space<vmem>>, %arg2: memref<1x32xf32, #tpu.memory_space<vmem>>, %arg3: memref<1x32xf32, #tpu.memory_space<vmem>>, %arg4: memref<32x128xf32, #tpu.memory_space<vmem>>, %arg5: memref<1x128xf32, #tpu.memory_space<vmem>>, %arg6: memref<128x32xf32, #tpu.memory_space<vmem>>, %arg7: memref<1x32xf32, #tpu.memory_space<vmem>>, %arg8: memref<16x32xf32, #tpu.memory_space<vmem>>) attributes {dimension_semantics = [#tpu.dimension_semantics<parallel>], iteration_bounds = array<i64: 1>, scalar_prefetch = 0 : i64, scratch_operands = 0 : i64, tpu.core_type = #tpu.core_type<tc>, window_params = [{transform_indices = @transform_0, window_bounds = array<i64: 16, 32>}, {pipeline_mode = #tpu.pipeline_mode<synchronous>, transform_indices = @transform_1, window_bounds = array<i64: 1, 32>}, {pipeline_mode = #tpu.pipeline_mode<synchronous>, transform_indices = @transform_2, window_bounds = array<i64: 1, 32>}, {pipeline_mode = #tpu.pipeline_mode<synchronous>, transform_indices = @transform_3, window_bounds = array<i64: 32, 128>}, {pipeline_mode = #tpu.pipeline_mode<synchronous>, transform_indices = @transform_4, window_bounds = array<i64: 1, 128>}, {pipeline_mode = #tpu.pipeline_mode<synchronous>, transform_indices = @transform_5, window_bounds = array<i64: 128, 32>}, {pipeline_mode = #tpu.pipeline_mode<synchronous>, transform_indices = @transform_6, window_bounds = array<i64: 1, 32>}, {transform_indices = @transform_7, window_bounds = array<i64: 16, 32>}]} {
    %c0 = arith.constant 0 : index
    %c0_0 = arith.constant 0 : index
    %0 = vector.load %arg1[%c0, %c0_0] : memref<16x32xf32, #tpu.memory_space<vmem>>, vector<16x32xf32>
    %c0_1 = arith.constant 0 : index
    %c0_2 = arith.constant 0 : index
    %1 = vector.load %arg2[%c0_1, %c0_2] : memref<1x32xf32, #tpu.memory_space<vmem>>, vector<1x32xf32>
    %c0_3 = arith.constant 0 : index
    %c0_4 = arith.constant 0 : index
    %2 = vector.load %arg3[%c0_3, %c0_4] : memref<1x32xf32, #tpu.memory_space<vmem>>, vector<1x32xf32>
    %cst = arith.constant dense<0.000000e+00> : vector<16xf32>
    %3 = vector.multi_reduction <add>, %0, %cst [1] : vector<16x32xf32> to vector<16xf32>
    %4 = vector.shape_cast %3 : vector<16xf32> to vector<16x1xf32>
    %cst_5 = arith.constant 3.200000e+01 : f32
    %5 = vector.broadcast %cst_5 : f32 to vector<16x1xf32>
    %6 = arith.divf %4, %5 : vector<16x1xf32>
    %7 = vector.broadcast %6 : vector<16x1xf32> to vector<16x32xf32>
    %8 = arith.subf %0, %7 : vector<16x32xf32>
    %9 = arith.mulf %8, %8 : vector<16x32xf32>
    %cst_6 = arith.constant dense<0.000000e+00> : vector<16xf32>
    %10 = vector.multi_reduction <add>, %9, %cst_6 [1] : vector<16x32xf32> to vector<16xf32>
    %11 = vector.shape_cast %10 : vector<16xf32> to vector<16x1xf32>
    %cst_7 = arith.constant 3.200000e+01 : f32
    %12 = vector.broadcast %cst_7 : f32 to vector<16x1xf32>
    %13 = arith.divf %11, %12 : vector<16x1xf32>
    %14 = vector.broadcast %6 : vector<16x1xf32> to vector<16x32xf32>
    %15 = arith.subf %0, %14 : vector<16x32xf32>
    %cst_8 = arith.constant 9.99999997E-7 : f32
    %16 = vector.broadcast %cst_8 : f32 to vector<16x1xf32>
    %17 = arith.addf %13, %16 : vector<16x1xf32>
    %18 = math.rsqrt %17 : vector<16x1xf32>
    %19 = vector.broadcast %18 : vector<16x1xf32> to vector<16x32xf32>
    %20 = arith.mulf %15, %19 : vector<16x32xf32>
    %21 = vector.broadcast %1 : vector<1x32xf32> to vector<16x32xf32>
    %22 = arith.mulf %20, %21 : vector<16x32xf32>
    %23 = vector.broadcast %2 : vector<1x32xf32> to vector<16x32xf32>
    %24 = arith.addf %22, %23 : vector<16x32xf32>
    %c0_9 = arith.constant 0 : index
    %c0_10 = arith.constant 0 : index
    %25 = vector.load %arg4[%c0_9, %c0_10] : memref<32x128xf32, #tpu.memory_space<vmem>>, vector<32x128xf32>
    %cst_11 = arith.constant dense<0.000000e+00> : vector<16x128xf32>
    %26 = tpu.matmul %24, %25, %cst_11 {dimension_numbers = #tpu.dot_dimension_numbers<[1], [0], [0], [1], [0, 0, 1, 1], [], []>} : vector<16x32xf32>, vector<32x128xf32>, vector<16x128xf32> -> vector<16x128xf32>
    %c0_12 = arith.constant 0 : index
    %c0_13 = arith.constant 0 : index
    %27 = vector.load %arg5[%c0_12, %c0_13] : memref<1x128xf32, #tpu.memory_space<vmem>>, vector<1x128xf32>
    %28 = vector.broadcast %27 : vector<1x128xf32> to vector<16x128xf32>
    %29 = arith.addf %26, %28 : vector<16x128xf32>
    %cst_14 = arith.constant 5.000000e-01 : f32
    %30 = vector.broadcast %cst_14 : f32 to vector<16x128xf32>
    %31 = arith.mulf %30, %29 : vector<16x128xf32>
    %cst_15 = arith.constant 0.707106769 : f32
    %32 = vector.broadcast %cst_15 : f32 to vector<16x128xf32>
    %33 = arith.mulf %29, %32 : vector<16x128xf32>
    %34 = math.erf %33 : vector<16x128xf32>
    %cst_16 = arith.constant 1.000000e+00 : f32
    %35 = vector.broadcast %cst_16 : f32 to vector<16x128xf32>
    %36 = arith.addf %35, %34 : vector<16x128xf32>
    %37 = arith.mulf %31, %36 : vector<16x128xf32>
    %c0_17 = arith.constant 0 : index
    %c0_18 = arith.constant 0 : index
    %38 = vector.load %arg6[%c0_17, %c0_18] : memref<128x32xf32, #tpu.memory_space<vmem>>, vector<128x32xf32>
    %cst_19 = arith.constant dense<0.000000e+00> : vector<16x32xf32>
    %39 = tpu.matmul %37, %38, %cst_19 {dimension_numbers = #tpu.dot_dimension_numbers<[1], [0], [0], [1], [0, 0, 1, 1], [], []>} : vector<16x128xf32>, vector<128x32xf32>, vector<16x32xf32> -> vector<16x32xf32>
    %c0_20 = arith.constant 0 : index
    %c0_21 = arith.constant 0 : index
    %40 = vector.load %arg7[%c0_20, %c0_21] : memref<1x32xf32, #tpu.memory_space<vmem>>, vector<1x32xf32>
    %41 = vector.broadcast %40 : vector<1x32xf32> to vector<16x32xf32>
    %42 = arith.addf %39, %41 : vector<16x32xf32>
    %43 = arith.addf %42, %0 : vector<16x32xf32>
    %c0_22 = arith.constant 0 : index
    %c0_23 = arith.constant 0 : index
    %44 = vector.load %arg8[%c0_22, %c0_23] : memref<16x32xf32, #tpu.memory_space<vmem>>, vector<16x32xf32>
    tpu.vector_store %arg8[%c0_22, %c0_23], %43 {strides = array<i32>} : memref<16x32xf32, #tpu.memory_space<vmem>>, vector<16x32xf32>,
    return
  }
  func.func @transform_0(%arg0: i32) -> (i32, i32) {
    %c0_i32 = arith.constant 0 : i32
    %c0_i32_0 = arith.constant 0 : i32
    return %arg0, %c0_i32 : i32, i32
  }
  func.func @transform_1(%arg0: i32) -> (i32, i32) {
    %c0_i32 = arith.constant 0 : i32
    %c0_i32_0 = arith.constant 0 : i32
    %c0_i32_1 = arith.constant 0 : i32
    return %c0_i32, %c0_i32_0 : i32, i32
  }
  func.func @transform_2(%arg0: i32) -> (i32, i32) {
    %c0_i32 = arith.constant 0 : i32
    %c0_i32_0 = arith.constant 0 : i32
    %c0_i32_1 = arith.constant 0 : i32
    return %c0_i32, %c0_i32_0 : i32, i32
  }
  func.func @transform_3(%arg0: i32) -> (i32, i32) {
    %c0_i32 = arith.constant 0 : i32
    %c0_i32_0 = arith.constant 0 : i32
    %c0_i32_1 = arith.constant 0 : i32
    return %c0_i32, %c0_i32_0 : i32, i32
  }
  func.func @transform_4(%arg0: i32) -> (i32, i32) {
    %c0_i32 = arith.constant 0 : i32
    %c0_i32_0 = arith.constant 0 : i32
    %c0_i32_1 = arith.constant 0 : i32
    return %c0_i32, %c0_i32_0 : i32, i32
  }
  func.func @transform_5(%arg0: i32) -> (i32, i32) {
    %c0_i32 = arith.constant 0 : i32
    %c0_i32_0 = arith.constant 0 : i32
    %c0_i32_1 = arith.constant 0 : i32
    return %c0_i32, %c0_i32_0 : i32, i32
  }
  func.func @transform_6(%arg0: i32) -> (i32, i32) {
    %c0_i32 = arith.constant 0 : i32
    %c0_i32_0 = arith.constant 0 : i32
    %c0_i32_1 = arith.constant 0 : i32
    return %c0_i32, %c0_i32_0 : i32, i32
  }
  func.func @transform_7(%arg0: i32) -> (i32, i32) {
    %c0_i32 = arith.constant 0 : i32
    %c0_i32_0 = arith.constant 0 : i32
    return %arg0, %c0_i32 : i32, i32
  }
}

module attributes {stable_mosaic.version = 11 : i64} {
  func.func @_ln_qkv_kernel(%arg0: i32, %arg1: memref<16x32xf32, #tpu.memory_space<vmem>>, %arg2: memref<1x32xf32, #tpu.memory_space<vmem>>, %arg3: memref<1x32xf32, #tpu.memory_space<vmem>>, %arg4: memref<32x96xf32, #tpu.memory_space<vmem>>, %arg5: memref<1x96xf32, #tpu.memory_space<vmem>>, %arg6: memref<16x96xf32, #tpu.memory_space<vmem>>) attributes {dimension_semantics = [#tpu.dimension_semantics<parallel>], iteration_bounds = array<i64: 1>, scalar_prefetch = 0 : i64, scratch_operands = 0 : i64, tpu.core_type = #tpu.core_type<tc>, window_params = [{transform_indices = @transform_0, window_bounds = array<i64: 16, 32>}, {pipeline_mode = #tpu.pipeline_mode<synchronous>, transform_indices = @transform_1, window_bounds = array<i64: 1, 32>}, {pipeline_mode = #tpu.pipeline_mode<synchronous>, transform_indices = @transform_2, window_bounds = array<i64: 1, 32>}, {pipeline_mode = #tpu.pipeline_mode<synchronous>, transform_indices = @transform_3, window_bounds = array<i64: 32, 96>}, {pipeline_mode = #tpu.pipeline_mode<synchronous>, transform_indices = @transform_4, window_bounds = array<i64: 1, 96>}, {transform_indices = @transform_5, window_bounds = array<i64: 16, 96>}]} {
    %c0 = arith.constant 0 : index
    %c0_0 = arith.constant 0 : index
    %0 = vector.load %arg1[%c0, %c0_0] : memref<16x32xf32, #tpu.memory_space<vmem>>, vector<16x32xf32>
    %c0_1 = arith.constant 0 : index
    %c0_2 = arith.constant 0 : index
    %1 = vector.load %arg2[%c0_1, %c0_2] : memref<1x32xf32, #tpu.memory_space<vmem>>, vector<1x32xf32>
    %c0_3 = arith.constant 0 : index
    %c0_4 = arith.constant 0 : index
    %2 = vector.load %arg3[%c0_3, %c0_4] : memref<1x32xf32, #tpu.memory_space<vmem>>, vector<1x32xf32>
    %cst = arith.constant dense<0.000000e+00> : vector<16xf32>
    %3 = vector.multi_reduction <add>, %0, %cst [1] : vector<16x32xf32> to vector<16xf32>
    %4 = vector.shape_cast %3 : vector<16xf32> to vector<16x1xf32>
    %cst_5 = arith.constant 3.200000e+01 : f32
    %5 = vector.broadcast %cst_5 : f32 to vector<16x1xf32>
    %6 = arith.divf %4, %5 : vector<16x1xf32>
    %7 = vector.broadcast %6 : vector<16x1xf32> to vector<16x32xf32>
    %8 = arith.subf %0, %7 : vector<16x32xf32>
    %9 = arith.mulf %8, %8 : vector<16x32xf32>
    %cst_6 = arith.constant dense<0.000000e+00> : vector<16xf32>
    %10 = vector.multi_reduction <add>, %9, %cst_6 [1] : vector<16x32xf32> to vector<16xf32>
    %11 = vector.shape_cast %10 : vector<16xf32> to vector<16x1xf32>
    %cst_7 = arith.constant 3.200000e+01 : f32
    %12 = vector.broadcast %cst_7 : f32 to vector<16x1xf32>
    %13 = arith.divf %11, %12 : vector<16x1xf32>
    %14 = vector.broadcast %6 : vector<16x1xf32> to vector<16x32xf32>
    %15 = arith.subf %0, %14 : vector<16x32xf32>
    %cst_8 = arith.constant 9.99999997E-7 : f32
    %16 = vector.broadcast %cst_8 : f32 to vector<16x1xf32>
    %17 = arith.addf %13, %16 : vector<16x1xf32>
    %18 = math.rsqrt %17 : vector<16x1xf32>
    %19 = vector.broadcast %18 : vector<16x1xf32> to vector<16x32xf32>
    %20 = arith.mulf %15, %19 : vector<16x32xf32>
    %21 = vector.broadcast %1 : vector<1x32xf32> to vector<16x32xf32>
    %22 = arith.mulf %20, %21 : vector<16x32xf32>
    %23 = vector.broadcast %2 : vector<1x32xf32> to vector<16x32xf32>
    %24 = arith.addf %22, %23 : vector<16x32xf32>
    %c0_9 = arith.constant 0 : index
    %c0_10 = arith.constant 0 : index
    %25 = vector.load %arg4[%c0_9, %c0_10] : memref<32x96xf32, #tpu.memory_space<vmem>>, vector<32x96xf32>
    %cst_11 = arith.constant dense<0.000000e+00> : vector<16x96xf32>
    %26 = tpu.matmul %24, %25, %cst_11 {dimension_numbers = #tpu.dot_dimension_numbers<[1], [0], [0], [1], [0, 0, 1, 1], [], []>} : vector<16x32xf32>, vector<32x96xf32>, vector<16x96xf32> -> vector<16x96xf32>
    %c0_12 = arith.constant 0 : index
    %c0_13 = arith.constant 0 : index
    %27 = vector.load %arg5[%c0_12, %c0_13] : memref<1x96xf32, #tpu.memory_space<vmem>>, vector<1x96xf32>
    %28 = vector.broadcast %27 : vector<1x96xf32> to vector<16x96xf32>
    %29 = arith.addf %26, %28 : vector<16x96xf32>
    %c0_14 = arith.constant 0 : index
    %c0_15 = arith.constant 0 : index
    %30 = vector.load %arg6[%c0_14, %c0_15] : memref<16x96xf32, #tpu.memory_space<vmem>>, vector<16x96xf32>
    tpu.vector_store %arg6[%c0_14, %c0_15], %29 {strides = array<i32>} : memref<16x96xf32, #tpu.memory_space<vmem>>, vector<16x96xf32>,
    return
  }
  func.func @transform_0(%arg0: i32) -> (i32, i32) {
    %c0_i32 = arith.constant 0 : i32
    %c0_i32_0 = arith.constant 0 : i32
    return %arg0, %c0_i32 : i32, i32
  }
  func.func @transform_1(%arg0: i32) -> (i32, i32) {
    %c0_i32 = arith.constant 0 : i32
    %c0_i32_0 = arith.constant 0 : i32
    %c0_i32_1 = arith.constant 0 : i32
    return %c0_i32, %c0_i32_0 : i32, i32
  }
  func.func @transform_2(%arg0: i32) -> (i32, i32) {
    %c0_i32 = arith.constant 0 : i32
    %c0_i32_0 = arith.constant 0 : i32
    %c0_i32_1 = arith.constant 0 : i32
    return %c0_i32, %c0_i32_0 : i32, i32
  }
  func.func @transform_3(%arg0: i32) -> (i32, i32) {
    %c0_i32 = arith.constant 0 : i32
    %c0_i32_0 = arith.constant 0 : i32
    %c0_i32_1 = arith.constant 0 : i32
    return %c0_i32, %c0_i32_0 : i32, i32
  }
  func.func @transform_4(%arg0: i32) -> (i32, i32) {
    %c0_i32 = arith.constant 0 : i32
    %c0_i32_0 = arith.constant 0 : i32
    %c0_i32_1 = arith.constant 0 : i32
    return %c0_i32, %c0_i32_0 : i32, i32
  }
  func.func @transform_5(%arg0: i32) -> (i32, i32) {
    %c0_i32 = arith.constant 0 : i32
    %c0_i32_0 = arith.constant 0 : i32
    return %arg0, %c0_i32 : i32, i32
  }
}

module attributes {stable_mosaic.version = 11 : i64} {
  func.func @_attn_out_res_kernel(%arg0: i32, %arg1: memref<1x8x96xf32, #tpu.memory_space<vmem>>, %arg2: memref<1x8x32xf32, #tpu.memory_space<vmem>>, %arg3: memref<32x32xf32, #tpu.memory_space<vmem>>, %arg4: memref<1x32xf32, #tpu.memory_space<vmem>>, %arg5: memref<1x8x32xf32, #tpu.memory_space<vmem>>, %arg6: memref<1x4x8x8xf32, #tpu.memory_space<vmem>>) attributes {dimension_semantics = [#tpu.dimension_semantics<parallel>], iteration_bounds = array<i64: 2>, scalar_prefetch = 0 : i64, scratch_operands = 0 : i64, tpu.core_type = #tpu.core_type<tc>, window_params = [{transform_indices = @transform_0, window_bounds = array<i64: 1, 8, 96>}, {transform_indices = @transform_1, window_bounds = array<i64: 1, 8, 32>}, {pipeline_mode = #tpu.pipeline_mode<synchronous>, transform_indices = @transform_2, window_bounds = array<i64: 32, 32>}, {pipeline_mode = #tpu.pipeline_mode<synchronous>, transform_indices = @transform_3, window_bounds = array<i64: 1, 32>}, {transform_indices = @transform_4, window_bounds = array<i64: 1, 8, 32>}, {transform_indices = @transform_5, window_bounds = array<i64: 1, 4, 8, 8>}]} {
    %c0 = arith.constant 0 : index
    %c0_0 = arith.constant 0 : index
    %c0_1 = arith.constant 0 : index
    %0 = vector.load %arg1[%c0, %c0_0, %c0_1] : memref<1x8x96xf32, #tpu.memory_space<vmem>>, vector<1x8x96xf32>
    %1 = vector.shape_cast %0 : vector<1x8x96xf32> to vector<8x96xf32>
    %2 = vector.extract_strided_slice %1 {offsets = [0, 0], sizes = [8, 8], strides = [1, 1]} : vector<8x96xf32> to vector<8x8xf32>
    %3 = vector.extract_strided_slice %1 {offsets = [0, 32], sizes = [8, 8], strides = [1, 1]} : vector<8x96xf32> to vector<8x8xf32>
    %4 = vector.extract_strided_slice %1 {offsets = [0, 64], sizes = [8, 8], strides = [1, 1]} : vector<8x96xf32> to vector<8x8xf32>
    %cst = arith.constant dense<0.000000e+00> : vector<8x8xf32>
    %5 = tpu.matmul %2, %3, %cst {dimension_numbers = #tpu.dot_dimension_numbers<[1], [1], [0], [0], [0, 0, 1, 0], [], []>} : vector<8x8xf32>, vector<8x8xf32>, vector<8x8xf32> -> vector<8x8xf32>
    %cst_2 = arith.constant 0.353553385 : f32
    %6 = vector.broadcast %cst_2 : f32 to vector<8x8xf32>
    %7 = arith.mulf %5, %6 : vector<8x8xf32>
    %cst_3 = arith.constant dense<0xFF800000> : vector<8xf32>
    %8 = vector.multi_reduction <maximumf>, %7, %cst_3 [1] : vector<8x8xf32> to vector<8xf32>
    %9 = vector.shape_cast %8 : vector<8xf32> to vector<8x1xf32>
    %10 = vector.broadcast %9 : vector<8x1xf32> to vector<8x8xf32>
    %11 = arith.subf %7, %10 : vector<8x8xf32>
    %12 = math.exp %11 : vector<8x8xf32>
    %cst_4 = arith.constant dense<0.000000e+00> : vector<8xf32>
    %13 = vector.multi_reduction <add>, %12, %cst_4 [1] : vector<8x8xf32> to vector<8xf32>
    %14 = vector.shape_cast %13 : vector<8xf32> to vector<8x1xf32>
    %cst_5 = arith.constant 1.000000e+00 : f32
    %15 = vector.broadcast %cst_5 : f32 to vector<8x1xf32>
    %16 = arith.divf %15, %14 : vector<8x1xf32>
    %cst_6 = arith.constant dense<0.000000e+00> : vector<8x8xf32>
    %17 = tpu.matmul %12, %4, %cst_6 {dimension_numbers = #tpu.dot_dimension_numbers<[1], [0], [0], [1], [0, 0, 1, 1], [], []>} : vector<8x8xf32>, vector<8x8xf32>, vector<8x8xf32> -> vector<8x8xf32>
    %18 = vector.broadcast %16 : vector<8x1xf32> to vector<8x8xf32>
    %19 = arith.mulf %17, %18 : vector<8x8xf32>
    %20 = vector.broadcast %16 : vector<8x1xf32> to vector<8x8xf32>
    %21 = arith.mulf %12, %20 : vector<8x8xf32>
    %c0_7 = arith.constant 0 : index
    %c0_8 = arith.constant 0 : index
    %c0_9 = arith.constant 0 : index
    %c0_10 = arith.constant 0 : index
    %22 = vector.load %arg6[%c0_7, %c0_8, %c0_9, %c0_10] : memref<1x4x8x8xf32, #tpu.memory_space<vmem>>, vector<1x1x8x8xf32>
    %23 = vector.shape_cast %22 : vector<1x1x8x8xf32> to vector<8x8xf32>
    %24 = vector.shape_cast %21 : vector<8x8xf32> to vector<1x1x8x8xf32>
    tpu.vector_store %arg6[%c0_7, %c0_8, %c0_9, %c0_10], %24 {strides = array<i32>} : memref<1x4x8x8xf32, #tpu.memory_space<vmem>>, vector<1x1x8x8xf32>,
    %25 = vector.extract_strided_slice %1 {offsets = [0, 8], sizes = [8, 8], strides = [1, 1]} : vector<8x96xf32> to vector<8x8xf32>
    %26 = vector.extract_strided_slice %1 {offsets = [0, 40], sizes = [8, 8], strides = [1, 1]} : vector<8x96xf32> to vector<8x8xf32>
    %27 = vector.extract_strided_slice %1 {offsets = [0, 72], sizes = [8, 8], strides = [1, 1]} : vector<8x96xf32> to vector<8x8xf32>
    %cst_11 = arith.constant dense<0.000000e+00> : vector<8x8xf32>
    %28 = tpu.matmul %25, %26, %cst_11 {dimension_numbers = #tpu.dot_dimension_numbers<[1], [1], [0], [0], [0, 0, 1, 0], [], []>} : vector<8x8xf32>, vector<8x8xf32>, vector<8x8xf32> -> vector<8x8xf32>
    %cst_12 = arith.constant 0.353553385 : f32
    %29 = vector.broadcast %cst_12 : f32 to vector<8x8xf32>
    %30 = arith.mulf %28, %29 : vector<8x8xf32>
    %cst_13 = arith.constant dense<0xFF800000> : vector<8xf32>
    %31 = vector.multi_reduction <maximumf>, %30, %cst_13 [1] : vector<8x8xf32> to vector<8xf32>
    %32 = vector.shape_cast %31 : vector<8xf32> to vector<8x1xf32>
    %33 = vector.broadcast %32 : vector<8x1xf32> to vector<8x8xf32>
    %34 = arith.subf %30, %33 : vector<8x8xf32>
    %35 = math.exp %34 : vector<8x8xf32>
    %cst_14 = arith.constant dense<0.000000e+00> : vector<8xf32>
    %36 = vector.multi_reduction <add>, %35, %cst_14 [1] : vector<8x8xf32> to vector<8xf32>
    %37 = vector.shape_cast %36 : vector<8xf32> to vector<8x1xf32>
    %cst_15 = arith.constant 1.000000e+00 : f32
    %38 = vector.broadcast %cst_15 : f32 to vector<8x1xf32>
    %39 = arith.divf %38, %37 : vector<8x1xf32>
    %cst_16 = arith.constant dense<0.000000e+00> : vector<8x8xf32>
    %40 = tpu.matmul %35, %27, %cst_16 {dimension_numbers = #tpu.dot_dimension_numbers<[1], [0], [0], [1], [0, 0, 1, 1], [], []>} : vector<8x8xf32>, vector<8x8xf32>, vector<8x8xf32> -> vector<8x8xf32>
    %41 = vector.broadcast %39 : vector<8x1xf32> to vector<8x8xf32>
    %42 = arith.mulf %40, %41 : vector<8x8xf32>
    %43 = vector.broadcast %39 : vector<8x1xf32> to vector<8x8xf32>
    %44 = arith.mulf %35, %43 : vector<8x8xf32>
    %c0_17 = arith.constant 0 : index
    %c1 = arith.constant 1 : index
    %c0_18 = arith.constant 0 : index
    %c0_19 = arith.constant 0 : index
    %45 = vector.load %arg6[%c0_17, %c1, %c0_18, %c0_19] : memref<1x4x8x8xf32, #tpu.memory_space<vmem>>, vector<1x1x8x8xf32>
    %46 = vector.shape_cast %45 : vector<1x1x8x8xf32> to vector<8x8xf32>
    %47 = vector.shape_cast %44 : vector<8x8xf32> to vector<1x1x8x8xf32>
    tpu.vector_store %arg6[%c0_17, %c1, %c0_18, %c0_19], %47 {strides = array<i32>} : memref<1x4x8x8xf32, #tpu.memory_space<vmem>>, vector<1x1x8x8xf32>,
    %48 = vector.extract_strided_slice %1 {offsets = [0, 16], sizes = [8, 8], strides = [1, 1]} : vector<8x96xf32> to vector<8x8xf32>
    %49 = vector.extract_strided_slice %1 {offsets = [0, 48], sizes = [8, 8], strides = [1, 1]} : vector<8x96xf32> to vector<8x8xf32>
    %50 = vector.extract_strided_slice %1 {offsets = [0, 80], sizes = [8, 8], strides = [1, 1]} : vector<8x96xf32> to vector<8x8xf32>
    %cst_20 = arith.constant dense<0.000000e+00> : vector<8x8xf32>
    %51 = tpu.matmul %48, %49, %cst_20 {dimension_numbers = #tpu.dot_dimension_numbers<[1], [1], [0], [0], [0, 0, 1, 0], [], []>} : vector<8x8xf32>, vector<8x8xf32>, vector<8x8xf32> -> vector<8x8xf32>
    %cst_21 = arith.constant 0.353553385 : f32
    %52 = vector.broadcast %cst_21 : f32 to vector<8x8xf32>
    %53 = arith.mulf %51, %52 : vector<8x8xf32>
    %cst_22 = arith.constant dense<0xFF800000> : vector<8xf32>
    %54 = vector.multi_reduction <maximumf>, %53, %cst_22 [1] : vector<8x8xf32> to vector<8xf32>
    %55 = vector.shape_cast %54 : vector<8xf32> to vector<8x1xf32>
    %56 = vector.broadcast %55 : vector<8x1xf32> to vector<8x8xf32>
    %57 = arith.subf %53, %56 : vector<8x8xf32>
    %58 = math.exp %57 : vector<8x8xf32>
    %cst_23 = arith.constant dense<0.000000e+00> : vector<8xf32>
    %59 = vector.multi_reduction <add>, %58, %cst_23 [1] : vector<8x8xf32> to vector<8xf32>
    %60 = vector.shape_cast %59 : vector<8xf32> to vector<8x1xf32>
    %cst_24 = arith.constant 1.000000e+00 : f32
    %61 = vector.broadcast %cst_24 : f32 to vector<8x1xf32>
    %62 = arith.divf %61, %60 : vector<8x1xf32>
    %cst_25 = arith.constant dense<0.000000e+00> : vector<8x8xf32>
    %63 = tpu.matmul %58, %50, %cst_25 {dimension_numbers = #tpu.dot_dimension_numbers<[1], [0], [0], [1], [0, 0, 1, 1], [], []>} : vector<8x8xf32>, vector<8x8xf32>, vector<8x8xf32> -> vector<8x8xf32>
    %64 = vector.broadcast %62 : vector<8x1xf32> to vector<8x8xf32>
    %65 = arith.mulf %63, %64 : vector<8x8xf32>
    %66 = vector.broadcast %62 : vector<8x1xf32> to vector<8x8xf32>
    %67 = arith.mulf %58, %66 : vector<8x8xf32>
    %c0_26 = arith.constant 0 : index
    %c2 = arith.constant 2 : index
    %c0_27 = arith.constant 0 : index
    %c0_28 = arith.constant 0 : index
    %68 = vector.load %arg6[%c0_26, %c2, %c0_27, %c0_28] : memref<1x4x8x8xf32, #tpu.memory_space<vmem>>, vector<1x1x8x8xf32>
    %69 = vector.shape_cast %68 : vector<1x1x8x8xf32> to vector<8x8xf32>
    %70 = vector.shape_cast %67 : vector<8x8xf32> to vector<1x1x8x8xf32>
    tpu.vector_store %arg6[%c0_26, %c2, %c0_27, %c0_28], %70 {strides = array<i32>} : memref<1x4x8x8xf32, #tpu.memory_space<vmem>>, vector<1x1x8x8xf32>,
    %71 = vector.extract_strided_slice %1 {offsets = [0, 24], sizes = [8, 8], strides = [1, 1]} : vector<8x96xf32> to vector<8x8xf32>
    %72 = vector.extract_strided_slice %1 {offsets = [0, 56], sizes = [8, 8], strides = [1, 1]} : vector<8x96xf32> to vector<8x8xf32>
    %73 = vector.extract_strided_slice %1 {offsets = [0, 88], sizes = [8, 8], strides = [1, 1]} : vector<8x96xf32> to vector<8x8xf32>
    %cst_29 = arith.constant dense<0.000000e+00> : vector<8x8xf32>
    %74 = tpu.matmul %71, %72, %cst_29 {dimension_numbers = #tpu.dot_dimension_numbers<[1], [1], [0], [0], [0, 0, 1, 0], [], []>} : vector<8x8xf32>, vector<8x8xf32>, vector<8x8xf32> -> vector<8x8xf32>
    %cst_30 = arith.constant 0.353553385 : f32
    %75 = vector.broadcast %cst_30 : f32 to vector<8x8xf32>
    %76 = arith.mulf %74, %75 : vector<8x8xf32>
    %cst_31 = arith.constant dense<0xFF800000> : vector<8xf32>
    %77 = vector.multi_reduction <maximumf>, %76, %cst_31 [1] : vector<8x8xf32> to vector<8xf32>
    %78 = vector.shape_cast %77 : vector<8xf32> to vector<8x1xf32>
    %79 = vector.broadcast %78 : vector<8x1xf32> to vector<8x8xf32>
    %80 = arith.subf %76, %79 : vector<8x8xf32>
    %81 = math.exp %80 : vector<8x8xf32>
    %cst_32 = arith.constant dense<0.000000e+00> : vector<8xf32>
    %82 = vector.multi_reduction <add>, %81, %cst_32 [1] : vector<8x8xf32> to vector<8xf32>
    %83 = vector.shape_cast %82 : vector<8xf32> to vector<8x1xf32>
    %cst_33 = arith.constant 1.000000e+00 : f32
    %84 = vector.broadcast %cst_33 : f32 to vector<8x1xf32>
    %85 = arith.divf %84, %83 : vector<8x1xf32>
    %cst_34 = arith.constant dense<0.000000e+00> : vector<8x8xf32>
    %86 = tpu.matmul %81, %73, %cst_34 {dimension_numbers = #tpu.dot_dimension_numbers<[1], [0], [0], [1], [0, 0, 1, 1], [], []>} : vector<8x8xf32>, vector<8x8xf32>, vector<8x8xf32> -> vector<8x8xf32>
    %87 = vector.broadcast %85 : vector<8x1xf32> to vector<8x8xf32>
    %88 = arith.mulf %86, %87 : vector<8x8xf32>
    %89 = vector.broadcast %85 : vector<8x1xf32> to vector<8x8xf32>
    %90 = arith.mulf %81, %89 : vector<8x8xf32>
    %c0_35 = arith.constant 0 : index
    %c3 = arith.constant 3 : index
    %c0_36 = arith.constant 0 : index
    %c0_37 = arith.constant 0 : index
    %91 = vector.load %arg6[%c0_35, %c3, %c0_36, %c0_37] : memref<1x4x8x8xf32, #tpu.memory_space<vmem>>, vector<1x1x8x8xf32>
    %92 = vector.shape_cast %91 : vector<1x1x8x8xf32> to vector<8x8xf32>
    %93 = vector.shape_cast %90 : vector<8x8xf32> to vector<1x1x8x8xf32>
    tpu.vector_store %arg6[%c0_35, %c3, %c0_36, %c0_37], %93 {strides = array<i32>} : memref<1x4x8x8xf32, #tpu.memory_space<vmem>>, vector<1x1x8x8xf32>,
    %94 = tpu.concatenate %19, %42, %65, %88 in 1 : vector<8x8xf32>, vector<8x8xf32>, vector<8x8xf32>, vector<8x8xf32> -> vector<8x32xf32>
    %c0_38 = arith.constant 0 : index
    %c0_39 = arith.constant 0 : index
    %95 = vector.load %arg3[%c0_38, %c0_39] : memref<32x32xf32, #tpu.memory_space<vmem>>, vector<32x32xf32>
    %cst_40 = arith.constant dense<0.000000e+00> : vector<8x32xf32>
    %96 = tpu.matmul %94, %95, %cst_40 {dimension_numbers = #tpu.dot_dimension_numbers<[1], [0], [0], [1], [0, 0, 1, 1], [], []>} : vector<8x32xf32>, vector<32x32xf32>, vector<8x32xf32> -> vector<8x32xf32>
    %c0_41 = arith.constant 0 : index
    %c0_42 = arith.constant 0 : index
    %97 = vector.load %arg4[%c0_41, %c0_42] : memref<1x32xf32, #tpu.memory_space<vmem>>, vector<1x32xf32>
    %98 = vector.broadcast %97 : vector<1x32xf32> to vector<8x32xf32>
    %99 = arith.addf %96, %98 : vector<8x32xf32>
    %c0_43 = arith.constant 0 : index
    %c0_44 = arith.constant 0 : index
    %c0_45 = arith.constant 0 : index
    %100 = vector.load %arg2[%c0_43, %c0_44, %c0_45] : memref<1x8x32xf32, #tpu.memory_space<vmem>>, vector<1x8x32xf32>
    %101 = vector.shape_cast %100 : vector<1x8x32xf32> to vector<8x32xf32>
    %102 = arith.addf %99, %101 : vector<8x32xf32>
    %c0_46 = arith.constant 0 : index
    %c0_47 = arith.constant 0 : index
    %c0_48 = arith.constant 0 : index
    %103 = vector.load %arg5[%c0_46, %c0_47, %c0_48] : memref<1x8x32xf32, #tpu.memory_space<vmem>>, vector<1x8x32xf32>
    %104 = vector.shape_cast %103 : vector<1x8x32xf32> to vector<8x32xf32>
    %105 = vector.shape_cast %102 : vector<8x32xf32> to vector<1x8x32xf32>
    tpu.vector_store %arg5[%c0_46, %c0_47, %c0_48], %105 {strides = array<i32>} : memref<1x8x32xf32, #tpu.memory_space<vmem>>, vector<1x8x32xf32>,
    return
  }
  func.func @transform_0(%arg0: i32) -> (i32, i32, i32) {
    %c0_i32 = arith.constant 0 : i32
    %c0_i32_0 = arith.constant 0 : i32
    %c0_i32_1 = arith.constant 0 : i32
    return %arg0, %c0_i32, %c0_i32_0 : i32, i32, i32
  }
  func.func @transform_1(%arg0: i32) -> (i32, i32, i32) {
    %c0_i32 = arith.constant 0 : i32
    %c0_i32_0 = arith.constant 0 : i32
    %c0_i32_1 = arith.constant 0 : i32
    return %arg0, %c0_i32, %c0_i32_0 : i32, i32, i32
  }
  func.func @transform_2(%arg0: i32) -> (i32, i32) {
    %c0_i32 = arith.constant 0 : i32
    %c0_i32_0 = arith.constant 0 : i32
    %c0_i32_1 = arith.constant 0 : i32
    return %c0_i32, %c0_i32_0 : i32, i32
  }
  func.func @transform_3(%arg0: i32) -> (i32, i32) {
    %c0_i32 = arith.constant 0 : i32
    %c0_i32_0 = arith.constant 0 : i32
    %c0_i32_1 = arith.constant 0 : i32
    return %c0_i32, %c0_i32_0 : i32, i32
  }
  func.func @transform_4(%arg0: i32) -> (i32, i32, i32) {
    %c0_i32 = arith.constant 0 : i32
    %c0_i32_0 = arith.constant 0 : i32
    %c0_i32_1 = arith.constant 0 : i32
    return %arg0, %c0_i32, %c0_i32_0 : i32, i32, i32
  }
  func.func @transform_5(%arg0: i32) -> (i32, i32, i32, i32) {
    %c0_i32 = arith.constant 0 : i32
    %c0_i32_0 = arith.constant 0 : i32
    %c0_i32_1 = arith.constant 0 : i32
    %c0_i32_2 = arith.constant 0 : i32
    return %arg0, %c0_i32, %c0_i32_0, %c0_i32_1 : i32, i32, i32, i32
  }
}

module attributes {stable_mosaic.version = 11 : i64} {
  func.func @_ln_qkv_kernel(%arg0: i32, %arg1: memref<16x32xf32, #tpu.memory_space<vmem>>, %arg2: memref<1x32xf32, #tpu.memory_space<vmem>>, %arg3: memref<1x32xf32, #tpu.memory_space<vmem>>, %arg4: memref<32x96xf32, #tpu.memory_space<vmem>>, %arg5: memref<1x96xf32, #tpu.memory_space<vmem>>, %arg6: memref<16x96xf32, #tpu.memory_space<vmem>>) attributes {dimension_semantics = [#tpu.dimension_semantics<parallel>], iteration_bounds = array<i64: 1>, scalar_prefetch = 0 : i64, scratch_operands = 0 : i64, tpu.core_type = #tpu.core_type<tc>, window_params = [{transform_indices = @transform_0, window_bounds = array<i64: 16, 32>}, {pipeline_mode = #tpu.pipeline_mode<synchronous>, transform_indices = @transform_1, window_bounds = array<i64: 1, 32>}, {pipeline_mode = #tpu.pipeline_mode<synchronous>, transform_indices = @transform_2, window_bounds = array<i64: 1, 32>}, {pipeline_mode = #tpu.pipeline_mode<synchronous>, transform_indices = @transform_3, window_bounds = array<i64: 32, 96>}, {pipeline_mode = #tpu.pipeline_mode<synchronous>, transform_indices = @transform_4, window_bounds = array<i64: 1, 96>}, {transform_indices = @transform_5, window_bounds = array<i64: 16, 96>}]} {
    %c0 = arith.constant 0 : index
    %c0_0 = arith.constant 0 : index
    %0 = vector.load %arg1[%c0, %c0_0] : memref<16x32xf32, #tpu.memory_space<vmem>>, vector<16x32xf32>
    %c0_1 = arith.constant 0 : index
    %c0_2 = arith.constant 0 : index
    %1 = vector.load %arg2[%c0_1, %c0_2] : memref<1x32xf32, #tpu.memory_space<vmem>>, vector<1x32xf32>
    %c0_3 = arith.constant 0 : index
    %c0_4 = arith.constant 0 : index
    %2 = vector.load %arg3[%c0_3, %c0_4] : memref<1x32xf32, #tpu.memory_space<vmem>>, vector<1x32xf32>
    %cst = arith.constant dense<0.000000e+00> : vector<16xf32>
    %3 = vector.multi_reduction <add>, %0, %cst [1] : vector<16x32xf32> to vector<16xf32>
    %4 = vector.shape_cast %3 : vector<16xf32> to vector<16x1xf32>
    %cst_5 = arith.constant 3.200000e+01 : f32
    %5 = vector.broadcast %cst_5 : f32 to vector<16x1xf32>
    %6 = arith.divf %4, %5 : vector<16x1xf32>
    %7 = vector.broadcast %6 : vector<16x1xf32> to vector<16x32xf32>
    %8 = arith.subf %0, %7 : vector<16x32xf32>
    %9 = arith.mulf %8, %8 : vector<16x32xf32>
    %cst_6 = arith.constant dense<0.000000e+00> : vector<16xf32>
    %10 = vector.multi_reduction <add>, %9, %cst_6 [1] : vector<16x32xf32> to vector<16xf32>
    %11 = vector.shape_cast %10 : vector<16xf32> to vector<16x1xf32>
    %cst_7 = arith.constant 3.200000e+01 : f32
    %12 = vector.broadcast %cst_7 : f32 to vector<16x1xf32>
    %13 = arith.divf %11, %12 : vector<16x1xf32>
    %14 = vector.broadcast %6 : vector<16x1xf32> to vector<16x32xf32>
    %15 = arith.subf %0, %14 : vector<16x32xf32>
    %cst_8 = arith.constant 9.99999997E-7 : f32
    %16 = vector.broadcast %cst_8 : f32 to vector<16x1xf32>
    %17 = arith.addf %13, %16 : vector<16x1xf32>
    %18 = math.rsqrt %17 : vector<16x1xf32>
    %19 = vector.broadcast %18 : vector<16x1xf32> to vector<16x32xf32>
    %20 = arith.mulf %15, %19 : vector<16x32xf32>
    %21 = vector.broadcast %1 : vector<1x32xf32> to vector<16x32xf32>
    %22 = arith.mulf %20, %21 : vector<16x32xf32>
    %23 = vector.broadcast %2 : vector<1x32xf32> to vector<16x32xf32>
    %24 = arith.addf %22, %23 : vector<16x32xf32>
    %c0_9 = arith.constant 0 : index
    %c0_10 = arith.constant 0 : index
    %25 = vector.load %arg4[%c0_9, %c0_10] : memref<32x96xf32, #tpu.memory_space<vmem>>, vector<32x96xf32>
    %cst_11 = arith.constant dense<0.000000e+00> : vector<16x96xf32>
    %26 = tpu.matmul %24, %25, %cst_11 {dimension_numbers = #tpu.dot_dimension_numbers<[1], [0], [0], [1], [0, 0, 1, 1], [], []>} : vector<16x32xf32>, vector<32x96xf32>, vector<16x96xf32> -> vector<16x96xf32>
    %c0_12 = arith.constant 0 : index
    %c0_13 = arith.constant 0 : index
    %27 = vector.load %arg5[%c0_12, %c0_13] : memref<1x96xf32, #tpu.memory_space<vmem>>, vector<1x96xf32>
    %28 = vector.broadcast %27 : vector<1x96xf32> to vector<16x96xf32>
    %29 = arith.addf %26, %28 : vector<16x96xf32>
    %c0_14 = arith.constant 0 : index
    %c0_15 = arith.constant 0 : index
    %30 = vector.load %arg6[%c0_14, %c0_15] : memref<16x96xf32, #tpu.memory_space<vmem>>, vector<16x96xf32>
    tpu.vector_store %arg6[%c0_14, %c0_15], %29 {strides = array<i32>} : memref<16x96xf32, #tpu.memory_space<vmem>>, vector<16x96xf32>,
    return
  }
  func.func @transform_0(%arg0: i32) -> (i32, i32) {
    %c0_i32 = arith.constant 0 : i32
    %c0_i32_0 = arith.constant 0 : i32
    return %arg0, %c0_i32 : i32, i32
  }
  func.func @transform_1(%arg0: i32) -> (i32, i32) {
    %c0_i32 = arith.constant 0 : i32
    %c0_i32_0 = arith.constant 0 : i32
    %c0_i32_1 = arith.constant 0 : i32
    return %c0_i32, %c0_i32_0 : i32, i32
  }
  func.func @transform_2(%arg0: i32) -> (i32, i32) {
    %c0_i32 = arith.constant 0 : i32
    %c0_i32_0 = arith.constant 0 : i32
    %c0_i32_1 = arith.constant 0 : i32
    return %c0_i32, %c0_i32_0 : i32, i32
  }
  func.func @transform_3(%arg0: i32) -> (i32, i32) {
    %c0_i32 = arith.constant 0 : i32
    %c0_i32_0 = arith.constant 0 : i32
    %c0_i32_1 = arith.constant 0 : i32
    return %c0_i32, %c0_i32_0 : i32, i32
  }
  func.func @transform_4(%arg0: i32) -> (i32, i32) {
    %c0_i32 = arith.constant 0 : i32
    %c0_i32_0 = arith.constant 0 : i32
    %c0_i32_1 = arith.constant 0 : i32
    return %c0_i32, %c0_i32_0 : i32, i32
  }
  func.func @transform_5(%arg0: i32) -> (i32, i32) {
    %c0_i32 = arith.constant 0 : i32
    %c0_i32_0 = arith.constant 0 : i32
    return %arg0, %c0_i32 : i32, i32
  }
}

module attributes {stable_mosaic.version = 11 : i64} {
  func.func @_ln_kernel(%arg0: i32, %arg1: memref<16x32xf32, #tpu.memory_space<vmem>>, %arg2: memref<1x32xf32, #tpu.memory_space<vmem>>, %arg3: memref<1x32xf32, #tpu.memory_space<vmem>>, %arg4: memref<16x32xf32, #tpu.memory_space<vmem>>) attributes {dimension_semantics = [#tpu.dimension_semantics<parallel>], iteration_bounds = array<i64: 1>, scalar_prefetch = 0 : i64, scratch_operands = 0 : i64, tpu.core_type = #tpu.core_type<tc>, window_params = [{transform_indices = @transform_0, window_bounds = array<i64: 16, 32>}, {pipeline_mode = #tpu.pipeline_mode<synchronous>, transform_indices = @transform_1, window_bounds = array<i64: 1, 32>}, {pipeline_mode = #tpu.pipeline_mode<synchronous>, transform_indices = @transform_2, window_bounds = array<i64: 1, 32>}, {transform_indices = @transform_3, window_bounds = array<i64: 16, 32>}]} {
    %c0 = arith.constant 0 : index
    %c0_0 = arith.constant 0 : index
    %0 = vector.load %arg1[%c0, %c0_0] : memref<16x32xf32, #tpu.memory_space<vmem>>, vector<16x32xf32>
    %c0_1 = arith.constant 0 : index
    %c0_2 = arith.constant 0 : index
    %1 = vector.load %arg2[%c0_1, %c0_2] : memref<1x32xf32, #tpu.memory_space<vmem>>, vector<1x32xf32>
    %c0_3 = arith.constant 0 : index
    %c0_4 = arith.constant 0 : index
    %2 = vector.load %arg3[%c0_3, %c0_4] : memref<1x32xf32, #tpu.memory_space<vmem>>, vector<1x32xf32>
    %cst = arith.constant dense<0.000000e+00> : vector<16xf32>
    %3 = vector.multi_reduction <add>, %0, %cst [1] : vector<16x32xf32> to vector<16xf32>
    %4 = vector.shape_cast %3 : vector<16xf32> to vector<16x1xf32>
    %cst_5 = arith.constant 3.200000e+01 : f32
    %5 = vector.broadcast %cst_5 : f32 to vector<16x1xf32>
    %6 = arith.divf %4, %5 : vector<16x1xf32>
    %7 = vector.broadcast %6 : vector<16x1xf32> to vector<16x32xf32>
    %8 = arith.subf %0, %7 : vector<16x32xf32>
    %9 = arith.mulf %8, %8 : vector<16x32xf32>
    %cst_6 = arith.constant dense<0.000000e+00> : vector<16xf32>
    %10 = vector.multi_reduction <add>, %9, %cst_6 [1] : vector<16x32xf32> to vector<16xf32>
    %11 = vector.shape_cast %10 : vector<16xf32> to vector<16x1xf32>
    %cst_7 = arith.constant 3.200000e+01 : f32
    %12 = vector.broadcast %cst_7 : f32 to vector<16x1xf32>
    %13 = arith.divf %11, %12 : vector<16x1xf32>
    %14 = vector.broadcast %6 : vector<16x1xf32> to vector<16x32xf32>
    %15 = arith.subf %0, %14 : vector<16x32xf32>
    %cst_8 = arith.constant 9.99999997E-7 : f32
    %16 = vector.broadcast %cst_8 : f32 to vector<16x1xf32>
    %17 = arith.addf %13, %16 : vector<16x1xf32>
    %18 = math.rsqrt %17 : vector<16x1xf32>
    %19 = vector.broadcast %18 : vector<16x1xf32> to vector<16x32xf32>
    %20 = arith.mulf %15, %19 : vector<16x32xf32>
    %21 = vector.broadcast %1 : vector<1x32xf32> to vector<16x32xf32>
    %22 = arith.mulf %20, %21 : vector<16x32xf32>
    %23 = vector.broadcast %2 : vector<1x32xf32> to vector<16x32xf32>
    %24 = arith.addf %22, %23 : vector<16x32xf32>
    %c0_9 = arith.constant 0 : index
    %c0_10 = arith.constant 0 : index
    %25 = vector.load %arg4[%c0_9, %c0_10] : memref<16x32xf32, #tpu.memory_space<vmem>>, vector<16x32xf32>
    tpu.vector_store %arg4[%c0_9, %c0_10], %24 {strides = array<i32>} : memref<16x32xf32, #tpu.memory_space<vmem>>, vector<16x32xf32>,
    return
  }
  func.func @transform_0(%arg0: i32) -> (i32, i32) {
    %c0_i32 = arith.constant 0 : i32
    %c0_i32_0 = arith.constant 0 : i32
    return %arg0, %c0_i32 : i32, i32
  }
  func.func @transform_1(%arg0: i32) -> (i32, i32) {
    %c0_i32 = arith.constant 0 : i32
    %c0_i32_0 = arith.constant 0 : i32
    %c0_i32_1 = arith.constant 0 : i32
    return %c0_i32, %c0_i32_0 : i32, i32
  }
  func.func @transform_2(%arg0: i32) -> (i32, i32) {
    %c0_i32 = arith.constant 0 : i32
    %c0_i32_0 = arith.constant 0 : i32
    %c0_i32_1 = arith.constant 0 : i32
    return %c0_i32, %c0_i32_0 : i32, i32
  }
  func.func @transform_3(%arg0: i32) -> (i32, i32) {
    %c0_i32 = arith.constant 0 : i32
    %c0_i32_0 = arith.constant 0 : i32
    return %arg0, %c0_i32 : i32, i32
  }
}

</mosaic_0001>

<bundles_post_ra>
// kernel: tpu_custom_call.1
= control target key start
LH: loop header
LB: loop body
LE: loop exit
PB: predicated region body
PF: predicated region fallthrough
CT: control target
= control target key end

     0   :  { %6 = vsyncpa [#allocation3], 0  ;;  %s125_s0 = inlined_call_operand.hbm [shape: f32[8,128], index: 0, kind: input, shape index: {}]   ;;  %s126_s1 = inlined_call_operand.hbm [shape: f32[8,128], index: 1, kind: output, shape index: {}]  }
   0x1   :  { %7 = vsyncpa [#allocation4], 0  ;;  %s89_s6 = smov [#allocation2]   ;;  %s41_s10 = scalar_lea.hbm %s125_s0, 128 }
   0x2   :  { %s14_s7 = sshll.u32 %s89_s6, 4  ;;  %p42_p0 = scmp.ne.s32.totalorder %s125_s0, %s41_s10  ;;  %s15_s7 = int_to_ptr.vmem [resolvable:$true] %s14_s7 }
   0x3   :  { %p45_p1 = scmp.lt.u32.totalorder %s41_s10, %s125_s0 }
   0x5   :  { %p47_p2 = pnand %p45_p1, %p42_p0 }
   0x7   :  { %50 = shalt.err (!%p47_p2)
}
   0x8   :  { %s51_s15 = scalar_lea.vmem %s15_s7, 128  ;;  %p56_p4 = scmp.lt.s32.totalorder %s15_s7, %s15_s7 }
   0x9   :  { %p52_p3 = scmp.ne.s32.totalorder %s15_s7, %s51_s15  ;;  %p57_p5 = scmp.lt.s32.totalorder %s51_s15, %s51_s15 }
   0xb   :  { %p58_p6 = por %p57_p5, %p56_p4 }
   0xd   :  { %p59_p7 = pnand %p58_p6, %p52_p3 }
   0xf   :  { %62 = shalt.err (!%p59_p7)
}
  0x10   :  { %17 = dma.hbm_to_vmem [thread:$0]  %s125_s0, 128, %s15_s7, [#allocation3]  }
  0x11   :  { %85 = dma.done.wait [#allocation3], 128  }
  0x12   :  { %86 = vsyncadd [#allocation3], 4294967168  ;;  %s90_s18 = smov [#allocation5]   ;;  %v21_v0 = vld [vmem:[#allocation2] sm:$0xff] }
  0x13   :  { %s30_s19 = sshll.u32 %s90_s18, 4  ;;  %v22_v1 = vadd.f32 1.0, %v21_v0  ;;  %s31_s19 = int_to_ptr.vmem [resolvable:$true] %s30_s19 }
  0x14   :  { %s63_s20 = scalar_lea.vmem %s31_s19, 128  ;;  %p68_p9 = scmp.lt.s32.totalorder %s31_s19, %s31_s19 }
  0x15   :  { %23 = vst [vmem:[#allocation5] sm:$0xff] %v22_v1  ;;  %p64_p8 = scmp.ne.s32.totalorder %s31_s19, %s63_s20  ;;  %p69_p10 = scmp.lt.s32.totalorder %s63_s20, %s63_s20 }
  0x17   :  { %p70_p11 = por %p69_p10, %p68_p9 }
  0x19   :  { %p71_p12 = pnand %p70_p11, %p64_p8 }
  0x1b   :  { %74 = shalt.err (!%p71_p12)
}
  0x1c   :  { %s75_s23 = scalar_lea.hbm %s126_s1, 128 }
  0x1d   :  { %p76_p13 = scmp.ne.s32.totalorder %s126_s1, %s75_s23  ;;  %p79_p0 = scmp.lt.u32.totalorder %s75_s23, %s126_s1 }
  0x1f   :  { %p81_p1 = pnand %p79_p0, %p76_p13 }
  0x21   :  { %84 = shalt.err (!%p81_p1)
}
  0x22   :  { %33 = dma.vmem_to_hbm [thread:$0]  %s31_s19, 128, %s126_s1, [#allocation4]  }
  0x23   :  { %87 = dma.done.wait [#allocation4], 128  }
  0x24   :  { %88 = vsyncadd [#allocation4], 4294967168 }
  0x25   :  { %37 = vsyncpa [#allocation3], 1 }
  0x26   :  { %38 = vsyncpa [#allocation4], 1 }

// kernel: _encoder_forward_packed.9
= control target key start
LH: loop header
LB: loop body
LE: loop exit
PB: predicated region body
PF: predicated region fallthrough
CT: control target
= control target key end

     0   :  { %vm30_vm0 = vcmask 261120   ;;  %s548_s0 = inlined_call_operand.vmem [shape: f32[16,32], index: 0, kind: input, shape index: {}]   ;;  %s549_s3 = inlined_call_operand.vmem [shape: f32[32,128], index: 3, kind: input, shape index: {}]   ;;  %s550_s5 = inlined_call_operand.vmem [shape: f32[128,32], index: 5, kind: input, shape index: {}]   ;;  %s551_s1 = inlined_call_operand.vmem [shape: f32[1,32], index: 1, kind: input, shape index: {}]   ;;  %s552_s2 = inlined_call_operand.vmem [shape: f32[1,32], index: 2, kind: input, shape index: {}]   ;;  %s553_s4 = inlined_call_operand.vmem [shape: f32[1,128], index: 4, kind: input, shape index: {}]   ;;  %s554_s6 = inlined_call_operand.vmem [shape: f32[1,32], index: 6, kind: input, shape index: {}]   ;;  %s555_s7 = inlined_call_operand.vmem [shape: f32[16,32], index: 7, kind: output, shape index: {}]  }
   0x1   :  { %v449_v0 = vld [vmem:[%s548_s0] sm:$0xff]  ;;  %v454_v1 = vld [vmem:[%s548_s0 + $0x8] sm:$0xff]  ;;  %v76_v16 = vld [vmem:[%s549_s3 + $0x10] sm:$0xff] }
   0x2   :  { %v31_v2 = vsel %vm30_vm0, %v449_v0, 0.0  ;;  %v34_v3 = vsel %vm30_vm0, %v454_v1, 0.0  ;;  %v74_v14 = vld [vmem:[%s549_s3] sm:$0xff]  ;;  %v75_v15 = vld [vmem:[%s549_s3 + $0x8] sm:$0xff]  ;;  %v77_v18 = vld [vmem:[%s549_s3 + $0x18] sm:$0xff] }
   0x3   :  { %32 = vadd.xlane.f32.xlu0 %v31_v2  ;;  %v358_v17 = vpack.c.bf16 %v75_v15, %v74_v14  ;;  %v362_v19 = vpack.c.bf16 %v77_v18, %v76_v16  ;;  %v176_v20 = vld [vmem:[%s550_s5] sm:$0xff]  ;;  %v177_v21 = vld [vmem:[%s550_s5 + $0x8] sm:$0xff]  ;;  %v178_v22 = vld [vmem:[%s550_s5 + $0x10] sm:$0xff] }
   0x4   :  { %v366_v23 = vpack.c.bf16 %v177_v21, %v176_v20  ;;  %v179_v24 = vld [vmem:[%s550_s5 + $0x18] sm:$0xff]  ;;  %v180_v26 = vld [vmem:[%s550_s5 + $0x20] sm:$0xff]  ;;  %v181_v27 = vld [vmem:[%s550_s5 + $0x28] sm:$0xff] }
   0x5   :  { %359 = vmatprep.subr.bf16.mxu0 %v358_v17  ;;  %v370_v25 = vpack.c.bf16 %v179_v24, %v178_v22  ;;  %v374_v28 = vpack.c.bf16 %v181_v27, %v180_v26  ;;  %v282_v36 = vld [vmem:[%s551_s1] ss:$0 sm:$0xff]  ;;  %v182_v45 = vld [vmem:[%s550_s5 + $0x30] sm:$0xff]  ;;  %v183_v46 = vld [vmem:[%s550_s5 + $0x38] sm:$0xff] }
   0x6   :  { %361 = vmatpush3.bf16.msra.mxu0 %v358_v17  ;;  %367 = vmatprep.subr.bf16.mxu1 %v366_v23  ;;  %v283_v38 = vld [vmem:[%s552_s2] ss:$0 sm:$0xff]  ;;  %v378_v47 = vpack.c.bf16 %v183_v46, %v182_v45  ;;  %v185_v49 = vld [vmem:[%s550_s5 + $0x48] sm:$0xff]  ;;  %v186_v51 = vld [vmem:[%s550_s5 + $0x50] sm:$0xff] }
   0x7   :  { %35 = vadd.xlane.f32.xlu0 %v34_v3  ;;  %363 = vmatprep.subr.bf16.mxu0 %v362_v19  ;;  %v184_v48 = vld [vmem:[%s550_s5 + $0x40] sm:$0xff]  ;;  %v187_v52 = vld [vmem:[%s550_s5 + $0x58] sm:$0xff]  ;;  %v189_v55 = vld [vmem:[%s550_s5 + $0x68] sm:$0xff] }
   0x8   :  { %369 = vmatpush3.bf16.msra.mxu1 %v366_v23  ;;  %v382_v50 = vpack.c.bf16 %v185_v49, %v184_v48  ;;  %v386_v53 = vpack.c.bf16 %v187_v52, %v186_v51  ;;  %v188_v54 = vld [vmem:[%s550_s5 + $0x60] sm:$0xff]  ;;  %v190_v57 = vld [vmem:[%s550_s5 + $0x70] sm:$0xff]  ;;  %v191_v58 = vld [vmem:[%s550_s5 + $0x78] sm:$0xff] }
   0x9   :  { %371 = vmatprep.subr.bf16.mxu1 %v370_v25  ;;  %v390_v56 = vpack.c.bf16 %v189_v55, %v188_v54  ;;  %v394_v59 = vpack.c.bf16 %v191_v58, %v190_v57  ;;  %v284_v60 = vld [vmem:[%s553_s4] ss:$0 sm:$0xff] }
   0xa   :  { %365 = vmatpush3.bf16.msra.mxu0 %v362_v19 }
   0xc   :  { %373 = vmatpush3.bf16.msra.mxu1 %v370_v25 }
   0xd   :  { %375 = vmatprep.subr.bf16.mxu1 %v374_v28 }
  0x10   :  { %377 = vmatpush3.bf16.msra.mxu1 %v374_v28 }
  0x11   :  { %379 = vmatprep.subr.bf16.mxu1 %v378_v47 }
  0x14   :  { %381 = vmatpush3.bf16.msra.mxu1 %v378_v47 }
  0x15   :  { %383 = vmatprep.subr.bf16.mxu1 %v382_v50 }
  0x18   :  { %385 = vmatpush3.bf16.msra.mxu1 %v382_v50 }
  0x19   :  { %387 = vmatprep.subr.bf16.mxu1 %v386_v53 }
  0x1c   :  { %389 = vmatpush3.bf16.msra.mxu1 %v386_v53 }
  0x1d   :  { %391 = vmatprep.subr.bf16.mxu1 %v390_v56 }
  0x20   :  { %393 = vmatpush3.bf16.msra.mxu1 %v390_v56 }
  0x21   :  { %395 = vmatprep.subr.bf16.mxu1 %v394_v59 }
  0x24   :  { %397 = vmatpush3.bf16.msra.mxu1 %v394_v59 }
  0x90   :  { %v33_v4 = vpop.xlane.xlu0 %32 }
  0x91   :  { %v38_v5 = vmul.f32 0.03125, %v33_v4 }
  0x93   :  { %v40_v6 = vsub.f32 %v449_v0, %v38_v5 }
  0x94   :  { %v36_v7 = vpop.xlane.xlu0 %35 }
  0x95   :  { %v39_v8 = vmul.f32 0.03125, %v36_v7  ;;  %v42_v9 = vmul.f32 %v40_v6, %v40_v6 }
  0x97   :  { %v41_v10 = vsub.f32 %v454_v1, %v39_v8  ;;  %v44_v11 = vsel %vm30_vm0, %v42_v9, 0.0 }
  0x98   :  { %45 = vadd.xlane.f32.xlu1 %v44_v11 }
  0x99   :  { %v43_v12 = vmul.f32 %v41_v10, %v41_v10 }
  0x9b   :  { %v47_v13 = vsel %vm30_vm0, %v43_v12, 0.0 }
  0x9c   :  { %48 = vadd.xlane.f32.xlu1 %v47_v13  ;;  %v287_v13 = vld [vmem:[%s554_s6] ss:$0 sm:$0xff] }
 0x125   :  { %v46_v29 = vpop.xlane.xlu1 %45 }
 0x126   :  { %v50_v30 = vmul.f32 0.03125, %v46_v29 }
 0x128   :  { %v52_v31 = vadd.f32 1e-06, %v50_v30 }
 0x129   :  { %v49_v32 = vpop.xlane.xlu1 %48 }
 0x12a   :  { %398 = vrsqrt.f32 %v52_v31  ;;  %v51_v33 = vmul.f32 0.03125, %v49_v32 }
 0x12c   :  { %v53_v34 = vadd.f32 1e-06, %v51_v33 }
 0x12e   :  { %400 = vrsqrt.f32 %v53_v34 }
 0x134   :  { %v399_v35 = vpop.eup %398 }
 0x135   :  { %v56_v37 = vmul.f32 %v399_v35, %v40_v6 }
 0x137   :  { %v64_v39 = vmul.f32 %v282_v36, %v56_v37 }
 0x138   :  { %v401_v40 = vpop.eup %400 }
 0x139   :  { %v57_v41 = vmul.f32 %v401_v40, %v41_v10  ;;  %v72_v42 = vadd.f32 %v283_v38, %v64_v39 }
 0x13b   :  { %v65_v43 = vmul.f32 %v282_v36, %v57_v41  ;;  %320 = vmatprep.mubr.msk.f32.mxu0 %vm30_vm0, %v72_v42 }
 0x13d   :  { %v73_v44 = vadd.f32 %v283_v38, %v65_v43 }
 0x13f   :  { %321 = vmatmul.mubr.msk.f32.vlgmr.msra.gmra.mrb[0].mxu0 %vm30_vm0, %v73_v44 }
 0x212   :  { %v322_v61 = vpop.f32.mrb[0].mxu0 }
 0x213   :  { %v163_v62 = vadd.f32 %v322_v61, %v284_v60  ;;  %v157_v63 = vpop.f32.mrb[1].mxu0 }
 0x214   :  { %v158_v2 = vadd.f32 %v284_v60, %v157_v63 }
 0x215   :  { %v169_v3 = vmul.f32 0.70710677, %v163_v62  ;;  %v167_v10 = vmul.f32 0.5, %v163_v62 }
 0x216   :  { %v168_v4 = vmul.f32 0.70710677, %v158_v2  ;;  %v166_v8 = vmul.f32 0.5, %v158_v2 }
 0x217   :  { %402 = verf.f32 %v169_v3 }
 0x218   :  { %404 = verf.f32 %v168_v4 }
 0x221   :  { %v403_v5 = vpop.eup %402 }
 0x222   :  { %v405_v6 = vpop.eup %404  ;;  %v173_v7 = vadd.f32 1.0, %v403_v5 }
 0x223   :  { %v172_v9 = vadd.f32 1.0, %v405_v6 }
 0x224   :  { %v175_v12 = vmul.f32 %v173_v7, %v167_v10 }
 0x225   :  { %v174_v11 = vmul.f32 %v172_v9, %v166_v8 }
 0x227   :  { %355 = vmatprep.mubr.f32.mxu1 %v174_v11 }
 0x228   :  { %356 = vmatmul.mubr.f32.vlgmr.msra.gmra.mrb[0].mxu1 %v175_v12 }
 0x2fb   :  { %v357_v14 = vpop.f32.mrb[0].mxu1 }
 0x2fc   :  { %v271_v15 = vadd.f32 %v357_v14, %v287_v13  ;;  %v265_v16 = vpop.f32.mrb[1].mxu1 }
 0x2fd   :  { %v266_v17 = vadd.f32 %v287_v13, %v265_v16 }
 0x2fe   :  { %v275_v18 = vadd.f32 %v271_v15, %v454_v1 }
 0x2ff   :  { %v274_v19 = vadd.f32 %v266_v17, %v449_v0 }
 0x300   :  { %277 = vst.msk [vmem:[%s555_s7 + $0x8] sm:$0xff] %vm30_vm0, %v275_v18 }
 0x301   :  { %276 = vst.msk [vmem:[%s555_s7] sm:$0xff] %vm30_vm0, %v274_v19 }

// kernel: _encoder_forward_packed.7
= control target key start
LH: loop header
LB: loop body
LE: loop exit
PB: predicated region body
PF: predicated region fallthrough
CT: control target
= control target key end

     0   :  { %10 = vsyncpa [#allocation3], 0  ;;  %s243_s18 = smov [#allocation2]   ;;  %s315_s0 = inlined_call_operand.vmem [shape: f32[16,32], index: 0, kind: input, shape index: {}]   ;;  %s316_s1 = inlined_call_operand.vmem [shape: f32[1,32], index: 1, kind: input, shape index: {}]   ;;  %s317_s2 = inlined_call_operand.vmem [shape: f32[1,32], index: 2, kind: input, shape index: {}]   ;;  %s318_s3 = inlined_call_operand.hbm [shape: f32[32,96], index: 3, kind: input, shape index: {}]   ;;  %s319_s4 = inlined_call_operand.vmem [shape: f32[1,96], index: 4, kind: input, shape index: {}]   ;;  %s320_s5 = inlined_call_operand.vmem [shape: f32[16,96], index: 5, kind: output, shape index: {}]  }
   0x1   :  { %s22_s19 = sshll.u32 %s243_s18, 4  ;;  %s219_s22 = scalar_lea.hbm %s318_s3, 512  ;;  %s23_s19 = int_to_ptr.vmem [resolvable:$true] %s22_s19 }
   0x2   :  { %p220_p0 = scmp.ne.s32.totalorder %s318_s3, %s219_s22  ;;  %p223_p1 = scmp.lt.u32.totalorder %s219_s22, %s318_s3 }
   0x4   :  { %p225_p2 = pnand %p223_p1, %p220_p0 }
   0x6   :  { %228 = shalt.err (!%p225_p2)
}
   0x7   :  { %s229_s27 = scalar_lea.vmem %s23_s19, 512  ;;  %p234_p4 = scmp.lt.s32.totalorder %s23_s19, %s23_s19 }
   0x8   :  { %p230_p3 = scmp.ne.s32.totalorder %s23_s19, %s229_s27  ;;  %p235_p5 = scmp.lt.s32.totalorder %s229_s27, %s229_s27 }
   0xa   :  { %p236_p6 = por %p235_p5, %p234_p4 }
   0xc   :  { %p237_p7 = pnand %p236_p6, %p230_p3 }
   0xe   :  { %240 = shalt.err (!%p237_p7)
}
   0xf   :  { %s244_s28 = smov 128   ;;  %s245_s29 = smov 8  }
  0x10   :  { %28 = dma.hbm_to_vmem [thread:$0]  %s318_s3, 512, %s23_s19, [#allocation3], %s244_s28, %s244_s28, %s245_s29  }
  0x11   :  { %241 = dma.done.wait [#allocation3], 512  }
  0x12   :  { %242 = vsyncadd [#allocation3], 4294966784  ;;  %vm38_vm0 = vcmask 261120   ;;  %v34_v0 = vld [vmem:[%s315_s0] sm:$0xff]  ;;  %v35_v1 = vld [vmem:[%s315_s0 + $0x8] sm:$0xff]  ;;  %vm174_vm1 = vcmask 785408  }
  0x13   :  { %v39_v2 = vsel %vm38_vm0, %v34_v0, 0.0  ;;  %v42_v3 = vsel %vm38_vm0, %v35_v1, 0.0  ;;  %v82_v14 = vld [vmem:[#allocation2] sm:$0xff]  ;;  %v83_v15 = vld [vmem:[#allocation2 + $0x8] sm:$0xff]  ;;  %v84_v16 = vld [vmem:[#allocation2 + $0x10] sm:$0xff] }
  0x14   :  { %40 = vadd.xlane.f32.xlu0 %v39_v2  ;;  %v204_v17 = vpack.c.bf16 %v83_v15, %v82_v14  ;;  %v85_v18 = vld [vmem:[#allocation2 + $0x18] sm:$0xff]  ;;  %v182_v27 = vld [vmem:[%s316_s1] ss:$0 sm:$0xff] }
  0x15   :  { %v208_v19 = vpack.c.bf16 %v85_v18, %v84_v16  ;;  %v183_v29 = vld [vmem:[%s317_s2] ss:$0 sm:$0xff] }
  0x16   :  { %205 = vmatprep.subr.bf16.mxu0 %v204_v17  ;;  %v184_v36 = vld [vmem:[%s319_s4] ss:$0 sm:$0xff] }
  0x17   :  { %207 = vmatpush3.bf16.msra.mxu0 %v204_v17 }
  0x18   :  { %43 = vadd.xlane.f32.xlu0 %v42_v3  ;;  %209 = vmatprep.subr.bf16.mxu0 %v208_v19 }
  0x1b   :  { %211 = vmatpush3.bf16.msra.mxu0 %v208_v19 }
  0xa1   :  { %v41_v4 = vpop.xlane.xlu0 %40 }
  0xa2   :  { %v46_v5 = vmul.f32 0.03125, %v41_v4 }
  0xa4   :  { %v48_v6 = vsub.f32 %v34_v0, %v46_v5 }
  0xa5   :  { %v44_v7 = vpop.xlane.xlu0 %43 }
  0xa6   :  { %v47_v8 = vmul.f32 0.03125, %v44_v7  ;;  %v50_v9 = vmul.f32 %v48_v6, %v48_v6 }
  0xa8   :  { %v49_v10 = vsub.f32 %v35_v1, %v47_v8  ;;  %v52_v11 = vsel %vm38_vm0, %v50_v9, 0.0 }
  0xa9   :  { %53 = vadd.xlane.f32.xlu1 %v52_v11 }
  0xaa   :  { %v51_v12 = vmul.f32 %v49_v10, %v49_v10 }
  0xac   :  { %v55_v13 = vsel %vm38_vm0, %v51_v12, 0.0 }
  0xad   :  { %56 = vadd.xlane.f32.xlu1 %v55_v13 }
 0x136   :  { %v54_v20 = vpop.xlane.xlu1 %53 }
 0x137   :  { %v58_v21 = vmul.f32 0.03125, %v54_v20 }
 0x139   :  { %v60_v22 = vadd.f32 1e-06, %v58_v21 }
 0x13a   :  { %v57_v23 = vpop.xlane.xlu1 %56 }
 0x13b   :  { %215 = vrsqrt.f32 %v60_v22  ;;  %v59_v24 = vmul.f32 0.03125, %v57_v23 }
 0x13d   :  { %v61_v25 = vadd.f32 1e-06, %v59_v24 }
 0x13f   :  { %217 = vrsqrt.f32 %v61_v25 }
 0x145   :  { %v216_v26 = vpop.eup %215 }
 0x146   :  { %v64_v28 = vmul.f32 %v216_v26, %v48_v6 }
 0x148   :  { %v72_v30 = vmul.f32 %v182_v27, %v64_v28 }
 0x149   :  { %v218_v31 = vpop.eup %217 }
 0x14a   :  { %v65_v32 = vmul.f32 %v218_v31, %v49_v10  ;;  %v80_v33 = vadd.f32 %v183_v29, %v72_v30 }
 0x14c   :  { %v73_v34 = vmul.f32 %v182_v27, %v65_v32  ;;  %201 = vmatprep.mubr.msk.f32.mxu0 %vm38_vm0, %v80_v33 }
 0x14e   :  { %v81_v35 = vadd.f32 %v183_v29, %v73_v34 }
 0x150   :  { %202 = vmatmul.mubr.msk.f32.vlgmr.msra.gmra.mrb[0].mxu0 %vm38_vm0, %v81_v35 }
 0x223   :  { %v203_v37 = vpop.f32.mrb[0].mxu0 }
 0x224   :  { %v171_v38 = vadd.f32 %v203_v37, %v184_v36  ;;  %v165_v39 = vpop.f32.mrb[1].mxu0 }
 0x225   :  { %v166_v40 = vadd.f32 %v184_v36, %v165_v39 }
 0x226   :  { %176 = vst.msk [vmem:[%s320_s5 + $0x8] sm:$0xff] %vm174_vm1, %v171_v38 }
 0x227   :  { %175 = vst.msk [vmem:[%s320_s5] sm:$0xff] %vm174_vm1, %v166_v40 }
 0x228   :  { %181 = vsyncpa [#allocation3], 1 }

// kernel: _encoder_forward_packed.10
= control target key start
LH: loop header
LB: loop body
LE: loop exit
PB: predicated region body
PF: predicated region fallthrough
CT: control target
= control target key end

     0   :  { %vm24_vm0 = vcmask 261120   ;;  %vm160_vm1 = vcmask 785408   ;;  %s270_s0 = inlined_call_operand.vmem [shape: f32[16,32], index: 0, kind: input, shape index: {}]   ;;  %s271_s3 = inlined_call_operand.vmem [shape: f32[32,96], index: 3, kind: input, shape index: {}]   ;;  %s272_s1 = inlined_call_operand.vmem [shape: f32[1,32], index: 1, kind: input, shape index: {}]   ;;  %s273_s2 = inlined_call_operand.vmem [shape: f32[1,32], index: 2, kind: input, shape index: {}]   ;;  %s274_s4 = inlined_call_operand.vmem [shape: f32[1,96], index: 4, kind: input, shape index: {}]   ;;  %s275_s5 = inlined_call_operand.vmem [shape: f32[16,96], index: 5, kind: output, shape index: {}]  }
   0x1   :  { %v20_v0 = vld [vmem:[%s270_s0] sm:$0xff]  ;;  %v21_v1 = vld [vmem:[%s270_s0 + $0x8] sm:$0xff]  ;;  %v70_v16 = vld [vmem:[%s271_s3 + $0x10] sm:$0xff] }
   0x2   :  { %v25_v2 = vsel %vm24_vm0, %v20_v0, 0.0  ;;  %v28_v3 = vsel %vm24_vm0, %v21_v1, 0.0  ;;  %v68_v14 = vld [vmem:[%s271_s3] sm:$0xff]  ;;  %v69_v15 = vld [vmem:[%s271_s3 + $0x8] sm:$0xff]  ;;  %v71_v18 = vld [vmem:[%s271_s3 + $0x18] sm:$0xff] }
   0x3   :  { %26 = vadd.xlane.f32.xlu0 %v25_v2  ;;  %v189_v17 = vpack.c.bf16 %v69_v15, %v68_v14  ;;  %v193_v19 = vpack.c.bf16 %v71_v18, %v70_v16  ;;  %v167_v27 = vld [vmem:[%s272_s1] ss:$0 sm:$0xff] }
   0x4   :  { %v168_v29 = vld [vmem:[%s273_s2] ss:$0 sm:$0xff] }
   0x5   :  { %190 = vmatprep.subr.bf16.mxu0 %v189_v17  ;;  %v169_v36 = vld [vmem:[%s274_s4] ss:$0 sm:$0xff] }
   0x6   :  { %192 = vmatpush3.bf16.msra.mxu0 %v189_v17 }
   0x7   :  { %29 = vadd.xlane.f32.xlu0 %v28_v3  ;;  %194 = vmatprep.subr.bf16.mxu0 %v193_v19 }
   0xa   :  { %196 = vmatpush3.bf16.msra.mxu0 %v193_v19 }
  0x90   :  { %v27_v4 = vpop.xlane.xlu0 %26 }
  0x91   :  { %v32_v5 = vmul.f32 0.03125, %v27_v4 }
  0x93   :  { %v34_v6 = vsub.f32 %v20_v0, %v32_v5 }
  0x94   :  { %v30_v7 = vpop.xlane.xlu0 %29 }
  0x95   :  { %v33_v8 = vmul.f32 0.03125, %v30_v7  ;;  %v36_v9 = vmul.f32 %v34_v6, %v34_v6 }
  0x97   :  { %v35_v10 = vsub.f32 %v21_v1, %v33_v8  ;;  %v38_v11 = vsel %vm24_vm0, %v36_v9, 0.0 }
  0x98   :  { %39 = vadd.xlane.f32.xlu1 %v38_v11 }
  0x99   :  { %v37_v12 = vmul.f32 %v35_v10, %v35_v10 }
  0x9b   :  { %v41_v13 = vsel %vm24_vm0, %v37_v12, 0.0 }
  0x9c   :  { %42 = vadd.xlane.f32.xlu1 %v41_v13 }
 0x125   :  { %v40_v20 = vpop.xlane.xlu1 %39 }
 0x126   :  { %v44_v21 = vmul.f32 0.03125, %v40_v20 }
 0x128   :  { %v46_v22 = vadd.f32 1e-06, %v44_v21 }
 0x129   :  { %v43_v23 = vpop.xlane.xlu1 %42 }
 0x12a   :  { %197 = vrsqrt.f32 %v46_v22  ;;  %v45_v24 = vmul.f32 0.03125, %v43_v23 }
 0x12c   :  { %v47_v25 = vadd.f32 1e-06, %v45_v24 }
 0x12e   :  { %199 = vrsqrt.f32 %v47_v25 }
 0x134   :  { %v198_v26 = vpop.eup %197 }
 0x135   :  { %v50_v28 = vmul.f32 %v198_v26, %v34_v6 }
 0x137   :  { %v58_v30 = vmul.f32 %v167_v27, %v50_v28 }
 0x138   :  { %v200_v31 = vpop.eup %199 }
 0x139   :  { %v51_v32 = vmul.f32 %v200_v31, %v35_v10  ;;  %v66_v33 = vadd.f32 %v168_v29, %v58_v30 }
 0x13b   :  { %v59_v34 = vmul.f32 %v167_v27, %v51_v32  ;;  %186 = vmatprep.mubr.msk.f32.mxu0 %vm24_vm0, %v66_v33 }
 0x13d   :  { %v67_v35 = vadd.f32 %v168_v29, %v59_v34 }
 0x13f   :  { %187 = vmatmul.mubr.msk.f32.vlgmr.msra.gmra.mrb[0].mxu0 %vm24_vm0, %v67_v35 }
 0x212   :  { %v188_v37 = vpop.f32.mrb[0].mxu0 }
 0x213   :  { %v157_v38 = vadd.f32 %v188_v37, %v169_v36  ;;  %v151_v39 = vpop.f32.mrb[1].mxu0 }
 0x214   :  { %v152_v40 = vadd.f32 %v169_v36, %v151_v39 }
 0x215   :  { %162 = vst.msk [vmem:[%s275_s5 + $0x8] sm:$0xff] %vm160_vm1, %v157_v38 }
 0x216   :  { %161 = vst.msk [vmem:[%s275_s5] sm:$0xff] %vm160_vm1, %v152_v40 }

// kernel: _encoder_forward_packed.8
= control target key start
LH: loop header
LB: loop body
LE: loop exit
PB: predicated region body
PF: predicated region fallthrough
CT: control target
= control target key end

     0   :  { %11 = vsyncpa [#allocation3], 0  ;;  %s1656_s0 = inlined_call_operand.vmem [shape: f32[2,8,96], index: 0, kind: input, shape index: {}]   ;;  %s1657_s1 = inlined_call_operand.vmem [shape: f32[2,8,32], index: 1, kind: input, shape index: {}]   ;;  %s1658_s2 = inlined_call_operand.vmem [shape: f32[32,32], index: 2, kind: input, shape index: {}]   ;;  %s1659_s3 = inlined_call_operand.vmem [shape: f32[1,32], index: 3, kind: input, shape index: {}]   ;;  %s1660_s4 = inlined_call_operand.vmem [shape: f32[2,8,32], index: 4, kind: output, shape index: {0}]   ;;  %s1661_s5 = inlined_call_operand.hbm [shape: f32[2,4,8,8], index: 5, kind: output, shape index: {1}]  }
   0x1   :  { %13 = vsyncpa [#allocation3 + $0x1], 0  ;;  %s1447_s18 = smov 0   ;;  %s1449_s19 = smov 0  }
   0x2   :  { %s1451_s20 = smov 0   ;;  %s1453_s21 = smov 0  }
   0x3 LB: > { %s1468_s22 = sadd.s32 4294967295, %s1396_s21   ;;  %s1152_s23 = sadd.s32 4294967294, %s1396_s21   ;;  %s1396_s21 = sphi %s1453_s21, %s1667_s21   ;;  %s1392_s20 = sphi %s1451_s20, %s1666_s20   ;;  %s1388_s19 = sphi %s1449_s19, %s1665_s19   ;;  %s1384_s18 = sphi %s1447_s18, %s1664_s18  }
   0x4   : > { %s1472_s24 = sadd.s32 1, %s1396_s21   ;;  %s146_s25 = sadd.s32 1, %s1392_s20 }
   0x5   : > { %s143_s26 = ssub.s32 %s1396_s21, %s1472_s24  ;;  %p156_p0 = scmp.ne.s32.totalorder %s1392_s20, %s1388_s19 }
   0x6   : > { %p144_p1 = scmp.eq.s32.totalorder %s143_s26, 0  ;;  %p157_p2 = scmp.eq.s32.totalorder %s1468_s22, 1 }
   0x7   : > { %p162_p3 = scmp.ne.s32.totalorder %s1388_s19, %s1384_s18  ;;  %p163_p4 = scmp.eq.s32.totalorder %s1152_s23, 1 }
   0x8   : > { %s1483_s27 = scalar_select %p144_p1, %s1392_s20, %s146_s25  }
   0x9   : > { %p1485_p5 = por %p157_p2, %p156_p0  ;;  %p1489_p6 = por %p163_p4, %p162_p3 }
   0xa   : > { %p1155_p7 = scmp.ge.s32.totalorder %s1396_s21, 1  ;;  %p201_p8 = scmp.lt.s32.totalorder %s1396_s21, 3 }
   0xc   : > { %p202_p9 = pnand %p1155_p7, %p201_p8 }
   0xd   : > { %p236_p10 = scmp.lt.s32.totalorder (!%p202_p9), %s1468_s22, 1  ;;  %v1398_v0 = vmov (!%p202_p9), 0.0   ;;  %vm1399_vm0 = vmmov (!%p202_p9), 0   ;;  %s1400_s10 = smov (!%p202_p9), 96   ;;  %vm252_vm1 = vcmask (!%p202_p9), 64512   ;;  %vm941_vm2 = vcmask (!%p202_p9), 130048  }
   0xe   : > { %205 = sbr.rel (%p202_p9) target bundleno = 1116 (0x45c), region = 36  ;;  %1204 = vmatprep.subr.mxu0 (!%p202_p9), %v1398_v0  ;;  %1206 = vmatprep.mubr.msk.f32.mxu0 (!%p202_p9), %vm1399_vm0, %v1398_v0  ;;  %s1401_s11 = smov (!%p202_p9), 120   ;;  %vm943_vm3 = vcmask (!%p202_p9), 195584   ;;  %vm956_vm4 = vcmask (!%p202_p9), 261120  }
   0xf   : > { %1214 = vmatprep.subr.mxu1 (!%p202_p9), %v1398_v0  ;;  %1216 = vmatprep.mubr.msk.f32.mxu1 (!%p202_p9), %vm1399_vm0, %v1398_v0  ;;  %s1402_s12 = smov (!%p202_p9), 88   ;;  %s1403_s13 = smov (!%p202_p9), 80  }
  0x10   : > { %s1404_s14 = smov (!%p202_p9), 112   ;;  %s1405_s15 = smov (!%p202_p9), 72  }
  0x11   : > { %s1406_s16 = smov (!%p202_p9), 104   ;;  %s1407_s17 = smov (!%p202_p9), 56  }
  0x12   : > { %s1408_s23 = smov (!%p202_p9), 64   ;;  %s1409_s25 = smov (!%p202_p9), 40  }
  0x13   : > { %s1410_s26 = smov (!%p202_p9), 48  }
  0x15   : > { %s237_s30 = scalar_select %p236_p10, %s1468_s22, 1 }
  0x17   : > { %s1503_s6 = sshll.u32 %s237_s30, 3  ;;  %s233_s30 = sand.u32 1, %s1388_s19  }
  0x18   : > { %s239_s9 = scalar_lea.vmem %s1656_s0, %s1503_s6  ;;  %s1156_s7 = sshll.u32 %s233_s30, 5 }
  0x19   : > { %v1509_v1 = vld [vmem:[%s239_s9] sm:$0xff]  ;;  %s1566_s8 = scalar_lea.vmem [#allocation2], %s1156_s7  ;;  %s1411_s9 = smov 8  }
  0x1a   : > { %250 = vrot.lane.b32.xlu0 %v1509_v1, %s1400_s10  ;;  %418 = vrot.lane.b32.xlu1 %v1509_v1, %s1401_s11  ;;  %s1054_s7 = sshll.u32 %s1566_s8, 4  ;;  %s1598_s7 = int_to_ptr.vmem [resolvable:$true] %s1054_s7 }
  0x1e   : > { %420 = vrot.lane.b32.xlu0 %v1509_v1, %s1402_s12  ;;  %590 = vrot.lane.b32.xlu1 %v1509_v1, %s1403_s13  ;;  %s1602_s13 = scalar_lea.sflag [#allocation3], %s233_s30 }
  0x22   : > { %588 = vrot.lane.b32.xlu0 %v1509_v1, %s1404_s14  ;;  %760 = vrot.lane.b32.xlu1 %v1509_v1, %s1405_s15  ;;  %s1334_s14 = scalar_lea.vmem %s1598_s7, 512 }
  0x23   : > { %p1335_p11 = scmp.ne.s32.totalorder %s1598_s7, %s1334_s14 }
  0x25   : > { %p1336_p12 = pnand %p1335_p11, %p1485_p5 }
  0x26   : > { %758 = vrot.lane.b32.xlu0 %v1509_v1, %s1406_s16 }
  0x27   : > { %p1337_p13 = pneg %p1336_p12 }
  0x8c   : > { %v251_v2 = vpop.permute.xlu0 %250  ;;  %v419_v3 = vpop.permute.xlu1 %418 }
  0x8d   : > { %1205 = vmatpush3.xpose.msk.msra.mxu0 %vm252_vm1, %v251_v2 }
  0x8e   : > { %1209 = vmatprep.subr.mxu0 %v1398_v0 }
  0x90   : > { %1207 = vmatmul.mubr.msk.f32.vlgmr.msra.gmra.mrb[0].mxu0 %vm252_vm1, %v1509_v1  ;;  %v421_v4 = vpop.permute.xlu0 %420  ;;  %v591_v5 = vpop.permute.xlu1 %590 }
  0x91   : > { %1215 = vmatpush3.xpose.msk.msra.mxu1 %vm252_vm1, %v421_v4  ;;  %1211 = vmatprep.mubr.msk.f32.mxu0 %vm1399_vm0, %v1398_v0  ;;  %v946_v4 = vld [vmem:[%s1658_s2 + $0x8] sm:$0xff] }
  0x92   : > { %1224 = vmatprep.subr.mxu1 %v1398_v0 }
  0x94   : > { %1217 = vmatmul.mubr.msk.f32.vlgmr.msra.gmra.mrb[0].mxu1 %vm252_vm1, %v419_v3  ;;  %v589_v6 = vpop.permute.xlu0 %588  ;;  %v761_v7 = vpop.permute.xlu1 %760  ;;  %v945_v3 = vld [vmem:[%s1658_s2] sm:$0xff] }
  0x95   : > { %1225 = vmatpush3.xpose.msk.msra.mxu1 %vm252_vm1, %v591_v5  ;;  %1226 = vmatprep.mubr.msk.f32.mxu1 %vm1399_vm0, %v1398_v0  ;;  %v947_v5 = vld [vmem:[%s1658_s2 + $0x10] sm:$0xff] }
  0x96   : > { %1234 = vmatprep.subr.mxu1 %v1398_v0 }
  0x98   : > { %1227 = vmatmul.mubr.msk.f32.vlgmr.msra.gmra.mrb[2].mxu1 %vm252_vm1, %v589_v6  ;;  %v759_v8 = vpop.permute.xlu0 %758  ;;  %v1412_v6 = vmov 0.0|0.0  }
  0x99   : > { %1235 = vmatpush3.xpose.msk.msra.mxu1 %vm252_vm1, %v761_v7  ;;  %1236 = vmatprep.mubr.msk.f32.mxu1 %vm1399_vm0, %v1398_v0  ;;  %v1256_v7 = vpack.c.bf16 %v946_v4, %v945_v3 }
  0x9a   : > { %1255 = vmatprep.subr.bf16.mxu1 %v1412_v6 }
  0x9c   : > { %1237 = vmatmul.mubr.msk.f32.vlgmr.msra.gmra.mrb[4].mxu1 %vm252_vm1, %v759_v8  ;;  %v948_v8 = vld [vmem:[%s1658_s2 + $0x18] sm:$0xff] }
  0x9d   : > { %1252 = vmatprep.mubr.msk.f32.mxu1 %vm1399_vm0, %v1398_v0  ;;  %1257 = vmatpush3.bf16.msra.mxu1 %v1256_v7 }
  0x9e   : > { %1258 = vmatprep.subr.bf16.mxu1 %v1412_v6 }
 0x163   : > { %v323_v9 = vpop.f32.mrb[0].mxu0 }
 0x164   : > { %v327_v10 = vmul.f32 0.35355338, %v323_v9  ;;  %v1208_v11 = vpop.f32.mrb[1].mxu0  ;;  %v1259_v9 = vpack.c.bf16 %v948_v8, %v947_v5 }
 0x166   : > { %v328_v12 = vsel %vm252_vm1, %v327_v10, -inf  ;;  %1260 = vmatpush3.bf16.msra.mxu1 %v1259_v9 }
 0x167   : > { %329 = vmax.xlane.f32.xlu1 %v328_v12  ;;  %v492_v13 = vpop.f32.mrb[0].mxu1 }
 0x168   : > { %v496_v14 = vmul.f32 0.35355338, %v492_v13  ;;  %v1218_v15 = vpop.f32.mrb[1].mxu1 }
 0x16a   : > { %v497_v16 = vsel %vm252_vm1, %v496_v14, -inf }
 0x16b   : > { %498 = vmax.xlane.f32.xlu0 %v497_v16  ;;  %v662_v17 = vpop.f32.mrb[2].mxu1 }
 0x16c   : > { %v666_v18 = vmul.f32 0.35355338, %v662_v17  ;;  %v1228_v19 = vpop.f32.mrb[3].mxu1 }
 0x16e   : > { %v667_v20 = vsel %vm252_vm1, %v666_v18, -inf }
 0x16f   : > { %668 = vmax.xlane.f32.xlu0 %v667_v20  ;;  %v832_v21 = vpop.f32.mrb[4].mxu1 }
 0x170   : > { %v1238_v22 = vpop.f32.mrb[5].mxu1  ;;  %v836_v23 = vmul.f32 0.35355338, %v832_v21 }
 0x172   : > { %v837_v24 = vsel %vm252_vm1, %v836_v23, -inf }
 0x178   : > { %508 = vrot.lane.b32.xlu1 %v1509_v1, %s1407_s17 }
 0x185   : > { %339 = vrot.lane.b32.xlu0 %v1509_v1, %s1408_s23  ;;  %s1413_s23 = smov 16  }
 0x189   : > { %848 = vrot.lane.b32.xlu0 %v1509_v1, %s1409_s25  ;;  %s1414_s25 = smov 24  }
 0x19c   : > { %838 = vmax.xlane.f32.xlu1 %v837_v24 }
 0x1ad   : > { %678 = vrot.lane.b32.xlu1 %v1509_v1, %s1410_s26  ;;  %s1182_s26 = sshll.u32 %s1468_s22, 9  ;;  %s1415_s22 = smov [#allocation2]  }
 0x1ae   : > { %s1596_s12 = scalar_lea.hbm %s1661_s5, %s1182_s26 }
 0x1f4   : > { %v330_v25 = vpop.xlane.xlu1 %329 }
 0x1f5   : > { %v331_v26 = vsub.f32 %v327_v10, %v330_v25 }
 0x1f7   : > { %v332_v27 = vmul.f32 1.442695, %v331_v26 }
 0x1f8   : > { %v499_v28 = vpop.xlane.xlu0 %498  ;;  %v509_v36 = vpop.permute.xlu1 %508 }
 0x1f9   : > { %1318 = vpow2.f32 %v332_v27  ;;  %v500_v29 = vsub.f32 %v496_v14, %v499_v28 }
 0x1fb   : > { %v501_v30 = vmul.f32 1.442695, %v500_v29 }
 0x1fc   : > { %v669_v31 = vpop.xlane.xlu0 %668 }
 0x1fd   : > { %1320 = vpow2.f32 %v501_v30  ;;  %v670_v32 = vsub.f32 %v666_v18, %v669_v31 }
 0x1ff   : > { %v671_v33 = vmul.f32 1.442695, %v670_v32 }
 0x200   : > { %v340_v34 = vpop.permute.xlu0 %339 }
 0x201   : > { %1322 = vpow2.f32 %v671_v33  ;;  %1210 = vmatpush3.msra.mxu0 %v340_v34 }
 0x202   : > { %1219 = vmatprep.subr.mxu0 %v1398_v0 }
 0x203   : > { %v1319_v35 = vpop.eup %1318 }
 0x204   : > { %1212 = vmatmul.mubr.msk.f32.vlgmr.msra.gmra.mrb[2].mxu0 %vm252_vm1, %v1319_v35  ;;  %v334_v40 = vsel %vm252_vm1, %v1319_v35, 0.0  ;;  %v849_v46 = vpop.permute.xlu0 %848 }
 0x205   : > { %1220 = vmatpush3.msra.mxu0 %v509_v36  ;;  %1221 = vmatprep.mubr.msk.f32.mxu0 %vm1399_vm0, %v1398_v0 }
 0x206   : > { %1229 = vmatprep.subr.mxu0 %v1398_v0 }
 0x207   : > { %v1321_v37 = vpop.eup %1320 }
 0x208   : > { %1222 = vmatmul.mubr.msk.f32.vlgmr.msra.gmra.mrb[4].mxu0 %vm252_vm1, %v1321_v37  ;;  %v503_v38 = vsel %vm252_vm1, %v1321_v37, 0.0 }
 0x209   : > { %504 = vadd.xlane.f32.xlu1 %v503_v38  ;;  %1231 = vmatprep.mubr.msk.f32.mxu0 %vm1399_vm0, %v1398_v0 }
 0x20b   : > { %v1323_v39 = vpop.eup %1322 }
 0x20c   : > { %v673_v41 = vsel %vm252_vm1, %v1323_v39, 0.0 }
 0x20d   : > { %335 = vadd.xlane.f32.xlu1 %v334_v40  ;;  %674 = vadd.xlane.f32.xlu0 %v673_v41 }
 0x229   : > { %v839_v42 = vpop.xlane.xlu1 %838 }
 0x22a   : > { %v840_v43 = vsub.f32 %v836_v23, %v839_v42 }
 0x22c   : > { %v841_v44 = vmul.f32 1.442695, %v840_v43 }
 0x22d   : > { %v679_v45 = vpop.permute.xlu1 %678 }
 0x22e   : > { %1324 = vpow2.f32 %v841_v44  ;;  %1230 = vmatpush3.msra.mxu0 %v679_v45 }
 0x22f   : > { %1232 = vmatmul.mubr.msk.f32.vlgmr.msra.gmra.mrb[6].mxu0 %vm252_vm1, %v1323_v39  ;;  %1239 = vmatprep.subr.mxu0 %v1398_v0 }
 0x230   : > { %1240 = vmatpush3.msra.mxu0 %v849_v46  ;;  %1241 = vmatprep.mubr.msk.f32.mxu0 %vm1399_vm0, %v1398_v0 }
 0x238   : > { %v1325_v47 = vpop.eup %1324 }
 0x239   : > { %1242 = vmatmul.mubr.msk.f32.vlgmr.msra.gmra.mrb[8].mxu0 %vm252_vm1, %v1325_v47  ;;  %v843_v48 = vsel %vm252_vm1, %v1325_v47, 0.0 }
 0x23a   : > { %844 = vadd.xlane.f32.xlu0 %v843_v48 }
 0x296   : > { %v505_v49 = vpop.xlane.xlu1 %504 }
 0x297   : > { %1326 = vrcp.f32 %v505_v49 }
 0x29a   : > { %v336_v50 = vpop.xlane.xlu1 %335  ;;  %v675_v51 = vpop.xlane.xlu0 %674 }
 0x29b   : > { %1328 = vrcp.f32 %v336_v50 }
 0x29c   : > { %1330 = vrcp.f32 %v675_v51 }
 0x2a1   : > { %v1327_v52 = vpop.eup %1326 }
 0x2a2   : > { %v585_v53 = vmul.f32 %v1327_v52, %v1321_v37 }
 0x2a4   : > { %1166 = vst.msk [vmem:[%s1566_s8 + $0x8] sm:$0xff] %vm252_vm1, %v585_v53 }
 0x2a5   : > { %v1329_v54 = vpop.eup %1328 }
 0x2a6   : > { %v1331_v55 = vpop.eup %1330  ;;  %v416_v56 = vmul.f32 %v1329_v54, %v1319_v35 }
 0x2a7   : > { %v755_v57 = vmul.f32 %v1331_v55, %v1323_v39 }
 0x2a8   : > { %417 = vst.msk [vmem:[%s1566_s8] sm:$0xff] %vm252_vm1, %v416_v56 }
 0x2a9   : > { %1170 = vst.msk [vmem:[%s1566_s8 + $0x10] sm:$0xff] %vm252_vm1, %v755_v57 }
 0x2c7   : > { %v845_v58 = vpop.xlane.xlu0 %844 }
 0x2c8   : > { %1332 = vrcp.f32 %v845_v58 }
 0x2d2   : > { %v1333_v59 = vpop.eup %1332 }
 0x2d3   : > { %v925_v60 = vmul.f32 %v1333_v59, %v1325_v47 }
 0x2d5   : > { %1174 = vst.msk [vmem:[%s1566_s8 + $0x18] sm:$0xff] %vm252_vm1, %v925_v60  ;;  %s1338_s8 = sshll.u32 %s1415_s22, 4  ;;  %s1339_s8 = int_to_ptr.vmem [resolvable:$false] %s1338_s8 }
 0x2d6   : > { %s1340_s15 = scalar_lea.vmem %s1339_s8, 1024  ;;  %p1341_p0 = scmp.lt.s32.totalorder %s1598_s7, %s1339_s8 }
 0x2d7   : > { %v411_v61 = vpop.f32.mrb[2].mxu0  ;;  %p1342_p1 = scmp.lt.s32.totalorder %s1340_s15, %s1334_s14 }
 0x2d8   : > { %v415_v62 = vmul.f32 %v1329_v54, %v411_v61  ;;  %v1213_v63 = vpop.f32.mrb[3].mxu0 }
 0x2d9   : > { %p1343_p2 = por %p1342_p1, %p1341_p0 }
 0x2db   : > { %v580_v0 = vpop.f32.mrb[4].mxu0  ;;  %p1344_p3 = pnand %p1343_p2, %p1337_p13 }
 0x2dc   : > { %v584_v1 = vmul.f32 %v1327_v52, %v580_v0  ;;  %v1223_v2 = vpop.f32.mrb[5].mxu0 }
 0x2de   : > { %929 = vrot.lane.b32.xlu0 %v584_v1, %s1411_s9 }
 0x302   : > { %v750_v10 = vpop.f32.mrb[6].mxu0 }
 0x303   : > { %v754_v11 = vmul.f32 %v1331_v55, %v750_v10  ;;  %v1233_v12 = vpop.f32.mrb[7].mxu0 }
 0x305   : > { %933 = vrot.lane.b32.xlu1 %v754_v11, %s1413_s23 }
 0x30c   : > { %v920_v13 = vpop.f32.mrb[8].mxu0 }
 0x30d   : > { %v924_v14 = vmul.f32 %v1333_v59, %v920_v13  ;;  %v1243_v15 = vpop.f32.mrb[9].mxu0 }
 0x30f   : > { %937 = vrot.lane.b32.xlu1 %v924_v14, %s1414_s25 }
 0x350   : > { %v930_v16 = vpop.permute.xlu0 %929 }
 0x351   : > { %v940_v18 = vsel %vm252_vm1, %v415_v62, %v930_v16 }
 0x377   : > { %v934_v17 = vpop.permute.xlu1 %933 }
 0x378   : > { %v942_v19 = vsel %vm941_vm2, %v940_v18, %v934_v17 }
 0x381   : > { %v938_v20 = vpop.permute.xlu1 %937 }
 0x382   : > { %v944_v21 = vsel %vm943_vm3, %v942_v19, %v938_v20 }
 0x383   : > { %1253 = vmatmul.mubr.msk.f32.vlgmr.msra.gmra.mrb[6].mxu1 %vm956_vm4, %v944_v21 }
 0x384   : > { %1347 = shalt.err (!%p1344_p3)
}
 0x385   : > { %s1348_s30 = scalar_lea.hbm %s1596_s12, 512  ;;  %s1352_s23 = scalar_lea.hbm %s1661_s5, 1024 }
 0x386   : > { %p1349_p4 = scmp.ne.s32.totalorder %s1596_s12, %s1348_s30  ;;  %p1353_p9 = scmp.lt.u32.totalorder %s1596_s12, %s1661_s5 }
 0x387   : > { %p1354_p10 = scmp.lt.u32.totalorder %s1352_s23, %s1348_s30  ;;  %p1356_p12 = scmp.lt.u32.totalorder %s1348_s30, %s1596_s12 }
 0x388   : > { %p1350_p7 = pnand %p1349_p4, %p1485_p5 }
 0x389   : > { %p1355_p11 = por %p1354_p10, %p1353_p9 }
 0x38a   : > { %p1351_p8 = pneg %p1350_p7 }
 0x38b   : > { %p1357_p13 = por %p1356_p12, %p1355_p11 }
 0x38d   : > { %p1358_p0 = pnand %p1357_p13, %p1351_p8 }
 0x38f   : > { %1361 = shalt.err (!%p1358_p0)
}
 0x390   : > { %s1416_s10 = smov 128   ;;  %s243_s22 = scalar_lea.vmem %s1657_s1, %s1503_s6  ;;  %v1175_v22 = vld [vmem:[%s1659_s3] ss:$0 sm:$0xff] }
 0x391   : > { %1261 = dma.vmem_to_hbm [thread:$0]  (%p1485_p5), %s1598_s7, 512, %s1596_s12, %s1602_s13, %s1416_s10, %s1416_s10, %s1411_s9  }
 0x392   : > { %v1030_v24 = vld [vmem:[%s243_s22] sm:$0xff]  ;;  %s247_s16 = scalar_lea.vmem %s1660_s4, %s1503_s6 }
 0x456   : > { %v1026_v23 = vpop.f32.mrb[6].mxu1 }
 0x457   : > { %v1027_v25 = vadd.f32 %v1175_v22, %v1026_v23  ;;  %v1254_v26 = vpop.f32.mrb[7].mxu1 }
 0x459   : > { %v1031_v27 = vadd.f32 %v1030_v24, %v1027_v25 }
 0x45b   : > { %1032 = vst.msk [vmem:[%s247_s16] sm:$0xff] %vm956_vm4, %v1031_v27 }
 0x45c PF: > { %p1267_p5 = scmp.ge.s32.totalorder %s1396_s21, 2  ;;  %s1076_s9 = sand.u32 1, %s1384_s18  }
 0x45d   : > { %s1077_s7 = scalar_lea.sflag [#allocation3], %s1076_s9 }
 0x45e   : > { %p1264_p1 = pnand %p1267_p5, %p1489_p6 }
 0x460   : > { %1379 = dma.done.wait (!%p1264_p1), %s1077_s7, 512  }
 0x461   : > { %1381 = vsyncadd (!%p1264_p1), %s1077_s7, 4294966784  ;;  %p16_p2 = scmp.ge.s32.totalorder %s1472_s24, 4   ;;  %s1664_s18 = smov %s1388_s19 }
 0x462   : > { %s1665_s19 = smov %s1392_s20  ;;  %s1666_s20 = smov %s1483_s27 }
 0x463   : > { %s1667_s21 = smov %s1472_s24  ;;  %18 = sbr.rel (!%p16_p2) target bundleno = 3 (0x3), region = 89 }
 0x46a   :  { %1082 = vsyncpa [#allocation3], 1 }
 0x46b   :  { %1084 = vsyncpa [#allocation3 + $0x1], 1 }

// kernel: _encoder_forward_packed.13
= control target key start
LH: loop header
LB: loop body
LE: loop exit
PB: predicated region body
PF: predicated region fallthrough
CT: control target
= control target key end

     0   :  { %vm19_vm0 = vcmask 261120   ;;  %s167_s0 = inlined_call_operand.vmem [shape: f32[16,32], index: 0, kind: input, shape index: {}]   ;;  %s168_s1 = inlined_call_operand.vmem [shape: f32[1,32], index: 1, kind: input, shape index: {}]   ;;  %s169_s2 = inlined_call_operand.vmem [shape: f32[1,32], index: 2, kind: input, shape index: {}]   ;;  %s170_s3 = inlined_call_operand.hbm [shape: f32[16,32], index: 3, kind: output, shape index: {}]  }
   0x1   :  { %v15_v0 = vld [vmem:[%s167_s0] sm:$0xff]  ;;  %v16_v1 = vld [vmem:[%s167_s0 + $0x8] sm:$0xff] }
   0x2   :  { %8 = vsyncpa [#allocation3], 0  ;;  %v20_v2 = vsel %vm19_vm0, %v15_v0, 0.0  ;;  %v23_v3 = vsel %vm19_vm0, %v16_v1, 0.0  ;;  %v81_v21 = vld [vmem:[%s168_s1] ss:$0 sm:$0xff] }
   0x3   :  { %21 = vadd.xlane.f32.xlu0 %v20_v2  ;;  %v82_v23 = vld [vmem:[%s169_s2] ss:$0 sm:$0xff]  ;;  %s114_s19 = smov [#allocation2]  }
   0x4   :  { %s70_s20 = sshll.u32 %s114_s19, 4  ;;  %s71_s20 = int_to_ptr.vmem [resolvable:$true] %s70_s20 }
   0x5   :  { %s90_s21 = scalar_lea.vmem %s71_s20, 256  ;;  %p95_p1 = scmp.lt.s32.totalorder %s71_s20, %s71_s20 }
   0x6   :  { %p91_p0 = scmp.ne.s32.totalorder %s71_s20, %s90_s21  ;;  %p96_p2 = scmp.lt.s32.totalorder %s90_s21, %s90_s21 }
   0x7   :  { %24 = vadd.xlane.f32.xlu0 %v23_v3 }
   0x8   :  { %p97_p3 = por %p96_p2, %p95_p1 }
   0xa   :  { %p98_p4 = pnand %p97_p3, %p91_p0 }
  0x90   :  { %v22_v4 = vpop.xlane.xlu0 %21 }
  0x91   :  { %v27_v5 = vmul.f32 0.03125, %v22_v4 }
  0x93   :  { %v29_v6 = vsub.f32 %v15_v0, %v27_v5 }
  0x94   :  { %v25_v7 = vpop.xlane.xlu0 %24 }
  0x95   :  { %v28_v8 = vmul.f32 0.03125, %v25_v7  ;;  %v31_v9 = vmul.f32 %v29_v6, %v29_v6 }
  0x97   :  { %v30_v10 = vsub.f32 %v16_v1, %v28_v8  ;;  %v33_v11 = vsel %vm19_vm0, %v31_v9, 0.0 }
  0x98   :  { %34 = vadd.xlane.f32.xlu1 %v33_v11 }
  0x99   :  { %v32_v12 = vmul.f32 %v30_v10, %v30_v10 }
  0x9b   :  { %v36_v13 = vsel %vm19_vm0, %v32_v12, 0.0 }
  0x9c   :  { %37 = vadd.xlane.f32.xlu1 %v36_v13 }
 0x125   :  { %v35_v14 = vpop.xlane.xlu1 %34 }
 0x126   :  { %v39_v15 = vmul.f32 0.03125, %v35_v14 }
 0x128   :  { %v41_v16 = vadd.f32 1e-06, %v39_v15 }
 0x129   :  { %v38_v17 = vpop.xlane.xlu1 %37 }
 0x12a   :  { %86 = vrsqrt.f32 %v41_v16  ;;  %v40_v18 = vmul.f32 0.03125, %v38_v17 }
 0x12c   :  { %v42_v19 = vadd.f32 1e-06, %v40_v18 }
 0x12e   :  { %88 = vrsqrt.f32 %v42_v19 }
 0x134   :  { %v87_v20 = vpop.eup %86 }
 0x135   :  { %v45_v22 = vmul.f32 %v87_v20, %v29_v6 }
 0x137   :  { %v53_v24 = vmul.f32 %v81_v21, %v45_v22 }
 0x138   :  { %v89_v25 = vpop.eup %88 }
 0x139   :  { %v46_v26 = vmul.f32 %v89_v25, %v30_v10  ;;  %v61_v27 = vadd.f32 %v82_v23, %v53_v24 }
 0x13b   :  { %v54_v28 = vmul.f32 %v81_v21, %v46_v26  ;;  %63 = vst.msk [vmem:[#allocation2] sm:$0xff] %vm19_vm0, %v61_v27 }
 0x13d   :  { %v62_v29 = vadd.f32 %v82_v23, %v54_v28 }
 0x13f   :  { %64 = vst.msk [vmem:[#allocation2 + $0x8] sm:$0xff] %vm19_vm0, %v62_v29 }
 0x140   :  { %101 = shalt.err (!%p98_p4)
}
 0x141   :  { %s102_s22 = scalar_lea.hbm %s170_s3, 256 }
 0x142   :  { %p103_p5 = scmp.ne.s32.totalorder %s170_s3, %s102_s22  ;;  %p106_p6 = scmp.lt.u32.totalorder %s102_s22, %s170_s3 }
 0x144   :  { %p108_p7 = pnand %p106_p6, %p103_p5 }
 0x146   :  { %111 = shalt.err (!%p108_p7)
}
 0x147   :  { %s115_s27 = smov 128   ;;  %s116_s28 = smov 8  }
 0x148   :  { %76 = dma.vmem_to_hbm [thread:$0]  %s71_s20, 256, %s170_s3, [#allocation3], %s115_s27, %s115_s27, %s116_s28  }
 0x149   :  { %112 = dma.done.wait [#allocation3], 256  }
 0x14a   :  { %113 = vsyncadd [#allocation3], 4294967040 }
 0x14b   :  { %80 = vsyncpa [#allocation3], 1 }

</bundles_post_ra>
